<compile_context>
chip_gen: v7x
topology: tpu7x:2x2x1
jax: 0.10.0
libtpu: 0.0.40
codegen_flags: <defaults>
</compile_context>

<pallas_src>
import numpy as np

import jax
import jax.numpy as jnp
from jax import lax
from jax.experimental import pallas as pl
from jax.experimental.pallas import tpu as pltpu


# ----------------------------------------------------------------------------
# Fused kernel
# ----------------------------------------------------------------------------
def make_fused_kernel(num_blocks, n_fc_v, n_fc_p, H, WC, Fv, Fp):
    """One kernel: residual-block stack + 1x1 heads + both MLP chains."""

    def kernel(*refs):
        (x_ref, w1_ref, s1_ref, b1_ref, w2_ref, s2_ref, b2_ref,
         hw_ref, hb_ref) = refs[:9]
        pos = 9
        fc_v = [(refs[pos + 2 * i], refs[pos + 2 * i + 1]) for i in range(n_fc_v)]
        pos += 2 * n_fc_v
        fc_p = [(refs[pos + 2 * i], refs[pos + 2 * i + 1]) for i in range(n_fc_p)]
        pos += 2 * n_fc_p
        policy_ref, value_ref = refs[pos], refs[pos + 1]
        pad_scr, head_scr, flatv_scr, flatp_scr = refs[pos + 2:pos + 6]

        N = x_ref.shape[0]

        # Zero the two height-halo rows once; the interior is rewritten per conv.
        zrow = jnp.zeros((N, 1, WC), jnp.float32)
        pad_scr[:, 0:1, :] = zrow
        pad_scr[:, H + 1:H + 2, :] = zrow

        def conv_bn(inp, w_bf16, s, b):
            # inp: (N, H, WC) f32 ; w_bf16: (3*WC, WC) ; s/b: (1, WC) f32
            pad_scr[:, 1:1 + H, :] = inp
            lhs = jnp.concatenate(
                [pad_scr[:, 0:H, :], pad_scr[:, 1:1 + H, :], pad_scr[:, 2:2 + H, :]],
                axis=-1)                                  # (N, H, 3*WC) f32
            lhs = lhs.reshape(N * H, 3 * WC).astype(jnp.bfloat16)
            y = jnp.dot(lhs, w_bf16, preferred_element_type=jnp.float32)
            y = y.reshape(N, H, WC)
            return y * s.reshape(1, 1, WC) + b.reshape(1, 1, WC)

        act = x_ref[...]                                  # (N, H, WC) f32
        for blk in range(num_blocks):
            out = conv_bn(act, w1_ref[blk], s1_ref[blk], b1_ref[blk])
            out = jnp.maximum(out, 0.0)
            out = conv_bn(out, w2_ref[blk], s2_ref[blk], b2_ref[blk])
            out = out + act
            out = jnp.maximum(out, 0.0)
            out = jnp.clip(out, -100.0, 100.0)
            # torch.nan_to_num runs after the clamp; inf cannot survive the
            # clamp so only NaN -> 0 matters.
            out = jnp.where(jnp.isnan(out), 0.0, out)
            act = out

        # ---- 1x1 value+policy heads: one block-diagonal lane-dense matmul ----
        a2d = act.reshape(N * H, WC).astype(jnp.bfloat16)
        heads = jnp.dot(a2d, hw_ref[...], preferred_element_type=jnp.float32)
        heads = heads + hb_ref[...]                       # (N*H, Fv + Fp)
        head_scr[...] = heads

        # ---- flatten (n, h) rows into per-sample lane vectors via VMEM ----
        # Kernel flat order is (h, w, cr); the permutation to torch's flatten
        # order (cr, h, w) is folded into the first FC layer's weight rows.
        for n in range(N):
            for h in range(H):
                r0 = n * H + h
                row = head_scr[r0:r0 + 1, :]              # (1, Fv + Fp)
                flatv_scr[n:n + 1, h * Fv:(h + 1) * Fv] = row[:, 0:Fv]
                flatp_scr[n:n + 1, h * Fp:(h + 1) * Fp] = row[:, Fv:Fv + Fp]

        def mm(a, w_ref, b_ref):
            return jnp.dot(a.astype(jnp.bfloat16), w_ref[...],
                           preferred_element_type=jnp.float32) + b_ref[...]

        def elu(v):
            # exact ELU(alpha=1): expm1(y) == tanh(y/2)*(exp(y)+1), no cancellation
            vn = jnp.minimum(v, 0.0)
            em1 = jnp.tanh(0.5 * vn) * (jnp.exp(vn) + 1.0)
            return jnp.where(v > 0.0, v, em1)

        v = flatv_scr[...]                                # (N, H*Fv) f32
        for i, (w, b) in enumerate(fc_v):
            v = mm(v, w, b)
            if i < n_fc_v - 1:
                v = elu(v)
        p = flatp_scr[...]                                # (N, H*Fp) f32
        for i, (w, b) in enumerate(fc_p):
            p = mm(p, w, b)
            if i < n_fc_p - 1:
                p = elu(p)

        policy_ref[...] = p
        value_ref[...] = v

    return kernel


# ----------------------------------------------------------------------------
# Wrapper
# ----------------------------------------------------------------------------
def _full_spec(shape):
    zeros = (0,) * len(shape)
    return pl.BlockSpec(tuple(shape), lambda i, _z=zeros: _z)


def prediction_network_forward(x_nchw, params):
    N, C, H, W = x_nchw.shape
    WC = W * C
    # NCHW -> lane-dense (N, H, W*C) layout (lane index = w*C + c)
    x = jnp.transpose(x_nchw, (0, 2, 3, 1)).reshape(N, H, WC).astype(jnp.float32)

    num_blocks = params["w1"].shape[0]
    n_v = len(params["fc_value"])
    n_p = len(params["fc_policy"])
    Fv = params["fc_value"][0][0].shape[0] // H    # = W * reduced_channels_value
    Fp = params["fc_policy"][0][0].shape[0] // H
    out_v = params["fc_value"][-1][0].shape[1]
    out_p = params["fc_policy"][-1][0].shape[1]

    args = [x, params["w1"], params["s1"], params["b1"],
            params["w2"], params["s2"], params["b2"],
            params["head_w"], params["head_b"]]
    for w, b in params["fc_value"]:
        args += [w, b]
    for w, b in params["fc_policy"]:
        args += [w, b]

    kernel = make_fused_kernel(num_blocks, n_v, n_p, H, WC, Fv, Fp)

    # Single grid step: all weights DMAed once, activation fully VMEM-resident.
    # TODO(synk): on v7x (2 TensorCores) split the batch over a 2-wide
    # "parallel" leading grid axis once N is large enough to tile cleanly.
    policy, value = pl.pallas_call(
        kernel,
        out_shape=(jax.ShapeDtypeStruct((N, out_p), jnp.float32),
                   jax.ShapeDtypeStruct((N, out_v), jnp.float32)),
        grid=(1,),
        in_specs=[_full_spec(a.shape) for a in args],
        out_specs=(_full_spec((N, out_p)), _full_spec((N, out_v))),
        scratch_shapes=[
            pltpu.VMEM((N, H + 2, WC), jnp.float32),    # height-halo padded conv input
            pltpu.VMEM((N * H, Fv + Fp), jnp.float32),  # 1x1-head output (rows = (n,h))
            pltpu.VMEM((N, H * Fv), jnp.float32),       # flattened value-head input
            pltpu.VMEM((N, H * Fp), jnp.float32),       # flattened policy-head input
        ],
        compiler_params=pltpu.CompilerParams(
            dimension_semantics=("arbitrary",)),
    )(*args)
    return policy, value


# ----------------------------------------------------------------------------
# Parameter construction (PyTorch-shaped randoms, repacked for the kernel)
# ----------------------------------------------------------------------------
def _conv3x3_banded_stacked(w_t, W):
    """(Co, Ci, 3, 3) torch conv weight -> (3*W*Ci, W*Co) banded matrix.
    dx taps + width zero-padding are folded in; the three dy row-blocks are
    pre-stacked so one K=3*W*Ci matmul does the whole 3x3 conv."""
    Co, Ci = w_t.shape[0], w_t.shape[1]
    mats = np.zeros((3, W * Ci, W * Co), np.float32)
    for dy in range(3):
        tap = np.transpose(w_t[:, :, dy, :], (2, 1, 0))   # (dx, Ci, Co)
        for w_out in range(W):
            for dx in range(3):
                w_in = w_out + dx - 1
                if 0 <= w_in < W:
                    mats[dy, w_in * Ci:(w_in + 1) * Ci,
                         w_out * Co:(w_out + 1) * Co] = tap[dx]
    return mats.reshape(3 * W * Ci, W * Co)


def _bn_fold_tiled(gamma, beta, mean, var, W, eps=1e-5):
    scale = gamma / jnp.sqrt(var + eps)
    bias = beta - mean * scale
    return (jnp.tile(scale, W).reshape(1, -1).astype(jnp.float32),
            jnp.tile(bias, W).reshape(1, -1).astype(jnp.float32))


def _head_blockdiag(wv, bv, wp, bp, W):
    """Both 1x1 heads as ONE block-diagonal lane-dense matrix.
    Rows: lane layout (w, c); cols: [value (w, cr_v) | policy (w, cr_p)]."""
    wv = np.asarray(wv, np.float32)
    wp = np.asarray(wp, np.float32)
    Crv, C = wv.shape
    Crp = wp.shape[0]
    M = np.zeros((W * C, W * (Crv + Crp)), np.float32)
    for w in range(W):
        M[w * C:(w + 1) * C, w * Crv:(w + 1) * Crv] = wv.T
        M[w * C:(w + 1) * C, W * Crv + w * Crp:W * Crv + (w + 1) * Crp] = wp.T
    bias = np.concatenate([np.tile(np.asarray(bv, np.float32), W),
                           np.tile(np.asarray(bp, np.float32), W)])[None, :]
    return M, bias


def _hwcr_row_perm(Cr, H, W):
    """Row permutation: kernel flat order (h, w, cr) -> torch order (cr, h, w)."""
    perm = np.zeros(Cr * H * W, np.int64)
    for h in range(H):
        for w in range(W):
            for cr in range(Cr):
                perm[h * W * Cr + w * Cr + cr] = cr * H * W + h * W + w
    return perm


def init_params(key, *, num_blocks, num_channels, red_v, red_p,
                fc_value_layers, fc_policy_layers,
                full_support_size, action_space_size, H, W):
    C = num_channels
    keys = iter(jax.random.split(key, 256))
    nk = lambda: next(keys)
    q = lambda a: jnp.asarray(a, jnp.bfloat16).astype(jnp.float32)  # bf16-round

    ref = {"blocks": []}
    w1_l, w2_l, s1_l, b1_l, s2_l, b2_l = [], [], [], [], [], []
    for _ in range(num_blocks):
        wt1 = jax.random.normal(nk(), (C, C, 3, 3), jnp.float32) * (1.0 / (3.0 * np.sqrt(C)))
        wt2 = jax.random.normal(nk(), (C, C, 3, 3), jnp.float32) * (1.0 / (3.0 * np.sqrt(C)))

        def rand_bn():
            g = 1.0 + 0.1 * jax.random.normal(nk(), (C,), jnp.float32)
            b = 0.1 * jax.random.normal(nk(), (C,), jnp.float32)
            m = 0.1 * jax.random.normal(nk(), (C,), jnp.float32)
            v = 0.5 + jax.random.uniform(nk(), (C,), jnp.float32)
            return g, b, m, v

        bn1, bn2 = rand_bn(), rand_bn()
        wt1q, wt2q = q(wt1), q(wt2)
        ref["blocks"].append({"w1": wt1q, "bn1": bn1, "w2": wt2q, "bn2": bn2})
        w1_l.append(_conv3x3_banded_stacked(np.asarray(wt1q), W))
        w2_l.append(_conv3x3_banded_stacked(np.asarray(wt2q), W))
        s1, b1 = _bn_fold_tiled(*bn1, W)
        s2, b2 = _bn_fold_tiled(*bn2, W)
        s1_l.append(s1); b1_l.append(b1); s2_l.append(s2); b2_l.append(b2)

    wv = jax.random.normal(nk(), (red_v, C), jnp.float32) * (1.0 / np.sqrt(C))
    bv = 0.1 * jax.random.normal(nk(), (red_v,), jnp.float32)
    wp = jax.random.normal(nk(), (red_p, C), jnp.float32) * (1.0 / np.sqrt(C))
    bp = 0.1 * jax.random.normal(nk(), (red_p,), jnp.float32)
    wvq, wpq = q(wv), q(wp)
    ref["wv"], ref["bv"], ref["wp"], ref["bp"] = wvq, bv, wpq, bp
    head_w, head_b = _head_blockdiag(np.asarray(wvq), np.asarray(bv),
                                     np.asarray(wpq), np.asarray(bp), W)

    def make_mlp(sizes, first_perm):
        layers_k, layers_ref = [], []
        for i in range(len(sizes) - 1):
            fi, fo = sizes[i], sizes[i + 1]
            wt = jax.random.normal(nk(), (fo, fi), jnp.float32) / np.sqrt(fi)
            bt = 0.1 * jax.random.normal(nk(), (fo,), jnp.float32)
            wtq = q(wt)
            layers_ref.append((wtq, bt))
            wk = np.asarray(wtq).T                    # (fi, fo)
            if i == 0:
                wk = wk[first_perm, :]                # fold flatten permutation
            layers_k.append((jnp.asarray(wk, jnp.bfloat16),
                             jnp.asarray(bt).reshape(1, fo).astype(jnp.float32)))
        return layers_k, layers_ref

    fc_v_k, fc_v_ref = make_mlp([red_v * H * W] + list(fc_value_layers) + [full_support_size],
                                _hwcr_row_perm(red_v, H, W))
    fc_p_k, fc_p_ref = make_mlp([red_p * H * W] + list(fc_policy_layers) + [action_space_size],
                                _hwcr_row_perm(red_p, H, W))
    ref["fc_value"], ref["fc_policy"] = fc_v_ref, fc_p_ref

    params = dict(
        w1=jnp.asarray(np.stack(w1_l), jnp.bfloat16),    # (B, 3*W*C, W*C)
        w2=jnp.asarray(np.stack(w2_l), jnp.bfloat16),
        s1=jnp.stack(s1_l), b1=jnp.stack(b1_l),          # (B, 1, W*C) f32
        s2=jnp.stack(s2_l), b2=jnp.stack(b2_l),
        head_w=jnp.asarray(head_w, jnp.bfloat16),        # (W*C, W*(Crv+Crp))
        head_b=jnp.asarray(head_b, jnp.float32),
        fc_value=fc_v_k, fc_policy=fc_p_k,
    )
    return params, ref


# ----------------------------------------------------------------------------
# Pure-JAX reference (f32 compute on bf16-rounded weights)
# ----------------------------------------------------------------------------
def reference_forward(x, ref):
    def conv(a, w, pad):
        return lax.conv_general_dilated(a, w, (1, 1), pad,
                                        dimension_numbers=("NCHW", "OIHW", "NCHW"))

    def bn(a, gbmv, eps=1e-5):
        g, b, m, v = gbmv
        return ((a - m[None, :, None, None]) * (g / jnp.sqrt(v + eps))[None, :, None, None]
                + b[None, :, None, None])

    h = x
    for blk in ref["blocks"]:
        idn = h
        o = jax.nn.relu(bn(conv(h, blk["w1"], ((1, 1), (1, 1))), blk["bn1"]))
        o = bn(conv(o, blk["w2"], ((1, 1), (1, 1))), blk["bn2"])
        o = jax.nn.relu(o + idn)
        o = jnp.clip(o, -100.0, 100.0)
        o = jnp.nan_to_num(o, nan=0.0, posinf=1.0, neginf=-1.0)
        h = o

    def head(a, w, b):
        y = conv(a, w[:, :, None, None], ((0, 0), (0, 0))) + b[None, :, None, None]
        return y.reshape(a.shape[0], -1)                 # torch .view order (cr, h, w)

    def mlpf(z, layers):
        for i, (w, b) in enumerate(layers):
            z = z @ w.T + b
            if i < len(layers) - 1:
                z = jax.nn.elu(z)
        return z

    v = mlpf(head(h, ref["wv"], ref["bv"]), ref["fc_value"])
    p = mlpf(head(h, ref["wp"], ref["bp"]), ref["fc_policy"])
    return p, v


# ----------------------------------------------------------------------------
if __name__ == "__main__":
    # Small, forward-consistent config (W*C = 128 -> lane-exact activations)
    N, C, H, W = 2, 16, 8, 8
    num_blocks = 2
    red_v, red_p = 4, 4
    fc_value_layers = [32]
    fc_policy_layers = [32]
    full_support_size = 21
    action_space_size = 6

    key = jax.random.PRNGKey(0)
    kx, kp = jax.random.split(key)
    params, ref_params = init_params(
        kp, num_blocks=num_blocks, num_channels=C, red_v=red_v, red_p=red_p,
        fc_value_layers=fc_value_layers, fc_policy_layers=fc_policy_layers,
        full_support_size=full_support_size, action_space_size=action_space_size,
        H=H, W=W)

    x = jax.random.normal(kx, (N, C, H, W), jnp.float32)  # NCHW, like PyTorch

    fwd = jax.jit(prediction_network_forward)
    policy, value = jax.block_until_ready(fwd(x, params))

    assert policy.shape == (N, action_space_size), policy.shape
    assert value.shape == (N, full_support_size), value.shape
    assert jnp.all(jnp.isfinite(policy)) and jnp.all(jnp.isfinite(value))

    # tolerance check vs pure-JAX f32 reference (kernel uses bf16 on the MXU)
    p_ref, v_ref = jax.jit(reference_forward)(x, ref_params)
    np.testing.assert_allclose(np.asarray(policy), np.asarray(p_ref),
                               rtol=5e-2, atol=1.5e-1)
    np.testing.assert_allclose(np.asarray(value), np.asarray(v_ref),
                               rtol=5e-2, atol=1.5e-1)

    print("KERNEL_OK")
</pallas_src>

<mosaic_0001>
module attributes {stable_mosaic.version = 11 : i64} {
  func.func @kernel(%arg0: i32, %arg1: memref<2x8x128xf32, #tpu.memory_space<vmem>>, %arg2: memref<2x384x128xbf16, #tpu.memory_space<vmem>>, %arg3: memref<2x1x128xf32, #tpu.memory_space<vmem>>, %arg4: memref<2x1x128xf32, #tpu.memory_space<vmem>>, %arg5: memref<2x384x128xbf16, #tpu.memory_space<vmem>>, %arg6: memref<2x1x128xf32, #tpu.memory_space<vmem>>, %arg7: memref<2x1x128xf32, #tpu.memory_space<vmem>>, %arg8: memref<128x64xbf16, #tpu.memory_space<vmem>>, %arg9: memref<1x64xf32, #tpu.memory_space<vmem>>, %arg10: memref<256x32xbf16, #tpu.memory_space<vmem>>, %arg11: memref<1x32xf32, #tpu.memory_space<vmem>>, %arg12: memref<32x21xbf16, #tpu.memory_space<vmem>>, %arg13: memref<1x21xf32, #tpu.memory_space<vmem>>, %arg14: memref<256x32xbf16, #tpu.memory_space<vmem>>, %arg15: memref<1x32xf32, #tpu.memory_space<vmem>>, %arg16: memref<32x6xbf16, #tpu.memory_space<vmem>>, %arg17: memref<1x6xf32, #tpu.memory_space<vmem>>, %arg18: memref<2x6xf32, #tpu.memory_space<vmem>>, %arg19: memref<2x21xf32, #tpu.memory_space<vmem>>, %arg20: memref<2x10x128xf32, #tpu.memory_space<vmem>>, %arg21: memref<16x64xf32, #tpu.memory_space<vmem>>, %arg22: memref<2x256xf32, #tpu.memory_space<vmem>>, %arg23: memref<2x256xf32, #tpu.memory_space<vmem>>) attributes {dimension_semantics = [#tpu.dimension_semantics<arbitrary>], iteration_bounds = array<i64: 1>, scalar_prefetch = 0 : i64, scratch_operands = 4 : i64, tpu.core_type = #tpu.core_type<tc>, window_params = [{pipeline_mode = #tpu.pipeline_mode<synchronous>, transform_indices = @transform_0, window_bounds = array<i64: 2, 8, 128>}, {pipeline_mode = #tpu.pipeline_mode<synchronous>, transform_indices = @transform_1, window_bounds = array<i64: 2, 384, 128>}, {pipeline_mode = #tpu.pipeline_mode<synchronous>, transform_indices = @transform_2, window_bounds = array<i64: 2, 1, 128>}, {pipeline_mode = #tpu.pipeline_mode<synchronous>, transform_indices = @transform_3, window_bounds = array<i64: 2, 1, 128>}, {pipeline_mode = #tpu.pipeline_mode<synchronous>, transform_indices = @transform_4, window_bounds = array<i64: 2, 384, 128>}, {pipeline_mode = #tpu.pipeline_mode<synchronous>, transform_indices = @transform_5, window_bounds = array<i64: 2, 1, 128>}, {pipeline_mode = #tpu.pipeline_mode<synchronous>, transform_indices = @transform_6, window_bounds = array<i64: 2, 1, 128>}, {pipeline_mode = #tpu.pipeline_mode<synchronous>, transform_indices = @transform_7, window_bounds = array<i64: 128, 64>}, {pipeline_mode = #tpu.pipeline_mode<synchronous>, transform_indices = @transform_8, window_bounds = array<i64: 1, 64>}, {pipeline_mode = #tpu.pipeline_mode<synchronous>, transform_indices = @transform_9, window_bounds = array<i64: 256, 32>}, {pipeline_mode = #tpu.pipeline_mode<synchronous>, transform_indices = @transform_10, window_bounds = array<i64: 1, 32>}, {pipeline_mode = #tpu.pipeline_mode<synchronous>, transform_indices = @transform_11, window_bounds = array<i64: 32, 21>}, {pipeline_mode = #tpu.pipeline_mode<synchronous>, transform_indices = @transform_12, window_bounds = array<i64: 1, 21>}, {pipeline_mode = #tpu.pipeline_mode<synchronous>, transform_indices = @transform_13, window_bounds = array<i64: 256, 32>}, {pipeline_mode = #tpu.pipeline_mode<synchronous>, transform_indices = @transform_14, window_bounds = array<i64: 1, 32>}, {pipeline_mode = #tpu.pipeline_mode<synchronous>, transform_indices = @transform_15, window_bounds = array<i64: 32, 6>}, {pipeline_mode = #tpu.pipeline_mode<synchronous>, transform_indices = @transform_16, window_bounds = array<i64: 1, 6>}, {pipeline_mode = #tpu.pipeline_mode<synchronous>, transform_indices = @transform_17, window_bounds = array<i64: 2, 6>}, {pipeline_mode = #tpu.pipeline_mode<synchronous>, transform_indices = @transform_18, window_bounds = array<i64: 2, 21>}]} {
    %cst = arith.constant 0.000000e+00 : f32
    %0 = vector.broadcast %cst : f32 to vector<2x1x128xf32>
    %c0 = arith.constant 0 : index
    %c0_0 = arith.constant 0 : index
    %c0_1 = arith.constant 0 : index
    %1 = vector.load %arg20[%c0, %c0_0, %c0_1] : memref<2x10x128xf32, #tpu.memory_space<vmem>>, vector<2x1x128xf32>
    tpu.vector_store %arg20[%c0, %c0_0, %c0_1], %0 {strides = array<i32>} : memref<2x10x128xf32, #tpu.memory_space<vmem>>, vector<2x1x128xf32>,
    %c0_2 = arith.constant 0 : index
    %c9 = arith.constant 9 : index
    %c0_3 = arith.constant 0 : index
    %2 = vector.load %arg20[%c0_2, %c9, %c0_3] : memref<2x10x128xf32, #tpu.memory_space<vmem>>, vector<2x1x128xf32>
    tpu.vector_store %arg20[%c0_2, %c9, %c0_3], %0 {strides = array<i32>} : memref<2x10x128xf32, #tpu.memory_space<vmem>>, vector<2x1x128xf32>,
    %c0_4 = arith.constant 0 : index
    %c0_5 = arith.constant 0 : index
    %c0_6 = arith.constant 0 : index
    %3 = vector.load %arg1[%c0_4, %c0_5, %c0_6] : memref<2x8x128xf32, #tpu.memory_space<vmem>>, vector<2x8x128xf32>
    %c0_7 = arith.constant 0 : index
    %c0_8 = arith.constant 0 : index
    %c0_9 = arith.constant 0 : index
    %4 = vector.load %arg2[%c0_7, %c0_8, %c0_9] : memref<2x384x128xbf16, #tpu.memory_space<vmem>>, vector<1x384x128xbf16>
    %5 = vector.shape_cast %4 : vector<1x384x128xbf16> to vector<384x128xbf16>
    %c0_10 = arith.constant 0 : index
    %c0_11 = arith.constant 0 : index
    %c0_12 = arith.constant 0 : index
    %6 = vector.load %arg3[%c0_10, %c0_11, %c0_12] : memref<2x1x128xf32, #tpu.memory_space<vmem>>, vector<1x1x128xf32>
    %7 = vector.shape_cast %6 : vector<1x1x128xf32> to vector<1x128xf32>
    %c0_13 = arith.constant 0 : index
    %c0_14 = arith.constant 0 : index
    %c0_15 = arith.constant 0 : index
    %8 = vector.load %arg4[%c0_13, %c0_14, %c0_15] : memref<2x1x128xf32, #tpu.memory_space<vmem>>, vector<1x1x128xf32>
    %9 = vector.shape_cast %8 : vector<1x1x128xf32> to vector<1x128xf32>
    %c0_16 = arith.constant 0 : index
    %c1 = arith.constant 1 : index
    %c0_17 = arith.constant 0 : index
    %10 = vector.load %arg20[%c0_16, %c1, %c0_17] : memref<2x10x128xf32, #tpu.memory_space<vmem>>, vector<2x8x128xf32>
    tpu.vector_store %arg20[%c0_16, %c1, %c0_17], %3 {strides = array<i32>} : memref<2x10x128xf32, #tpu.memory_space<vmem>>, vector<2x8x128xf32>,
    %c0_18 = arith.constant 0 : index
    %c0_19 = arith.constant 0 : index
    %c0_20 = arith.constant 0 : index
    %11 = vector.load %arg20[%c0_18, %c0_19, %c0_20] : memref<2x10x128xf32, #tpu.memory_space<vmem>>, vector<2x8x128xf32>
    %c0_21 = arith.constant 0 : index
    %c1_22 = arith.constant 1 : index
    %c0_23 = arith.constant 0 : index
    %12 = vector.load %arg20[%c0_21, %c1_22, %c0_23] : memref<2x10x128xf32, #tpu.memory_space<vmem>>, vector<2x8x128xf32>
    %c0_24 = arith.constant 0 : index
    %c2 = arith.constant 2 : index
    %c0_25 = arith.constant 0 : index
    %13 = vector.load %arg20[%c0_24, %c2, %c0_25] : memref<2x10x128xf32, #tpu.memory_space<vmem>>, vector<2x8x128xf32>
    %14 = tpu.concatenate %11, %12, %13 in 2 : vector<2x8x128xf32>, vector<2x8x128xf32>, vector<2x8x128xf32> -> vector<2x8x384xf32>
    %15 = vector.shape_cast %14 : vector<2x8x384xf32> to vector<16x384xf32>
    %16 = arith.truncf %15 : vector<16x384xf32> to vector<16x384xbf16>
    %cst_26 = arith.constant dense<0.000000e+00> : vector<16x128xf32>
    %17 = tpu.matmul %16, %5, %cst_26 {dimension_numbers = #tpu.dot_dimension_numbers<[1], [0], [0], [1], [0, 0, 1, 1], [], []>} : vector<16x384xbf16>, vector<384x128xbf16>, vector<16x128xf32> -> vector<16x128xf32>
    %18 = vector.shape_cast %17 : vector<16x128xf32> to vector<2x8x128xf32>
    %19 = vector.shape_cast %7 : vector<1x128xf32> to vector<1x1x128xf32>
    %20 = vector.broadcast %19 : vector<1x1x128xf32> to vector<2x8x128xf32>
    %21 = arith.mulf %18, %20 : vector<2x8x128xf32>
    %22 = vector.shape_cast %9 : vector<1x128xf32> to vector<1x1x128xf32>
    %23 = vector.broadcast %22 : vector<1x1x128xf32> to vector<2x8x128xf32>
    %24 = arith.addf %21, %23 : vector<2x8x128xf32>
    %cst_27 = arith.constant 0.000000e+00 : f32
    %25 = vector.broadcast %cst_27 : f32 to vector<2x8x128xf32>
    %26 = arith.maximumf %24, %25 : vector<2x8x128xf32>
    %c0_28 = arith.constant 0 : index
    %c0_29 = arith.constant 0 : index
    %c0_30 = arith.constant 0 : index
    %27 = vector.load %arg5[%c0_28, %c0_29, %c0_30] : memref<2x384x128xbf16, #tpu.memory_space<vmem>>, vector<1x384x128xbf16>
    %28 = vector.shape_cast %27 : vector<1x384x128xbf16> to vector<384x128xbf16>
    %c0_31 = arith.constant 0 : index
    %c0_32 = arith.constant 0 : index
    %c0_33 = arith.constant 0 : index
    %29 = vector.load %arg6[%c0_31, %c0_32, %c0_33] : memref<2x1x128xf32, #tpu.memory_space<vmem>>, vector<1x1x128xf32>
    %30 = vector.shape_cast %29 : vector<1x1x128xf32> to vector<1x128xf32>
    %c0_34 = arith.constant 0 : index
    %c0_35 = arith.constant 0 : index
    %c0_36 = arith.constant 0 : index
    %31 = vector.load %arg7[%c0_34, %c0_35, %c0_36] : memref<2x1x128xf32, #tpu.memory_space<vmem>>, vector<1x1x128xf32>
    %32 = vector.shape_cast %31 : vector<1x1x128xf32> to vector<1x128xf32>
    %c0_37 = arith.constant 0 : index
    %c1_38 = arith.constant 1 : index
    %c0_39 = arith.constant 0 : index
    %33 = vector.load %arg20[%c0_37, %c1_38, %c0_39] : memref<2x10x128xf32, #tpu.memory_space<vmem>>, vector<2x8x128xf32>
    tpu.vector_store %arg20[%c0_37, %c1_38, %c0_39], %26 {strides = array<i32>} : memref<2x10x128xf32, #tpu.memory_space<vmem>>, vector<2x8x128xf32>,
    %c0_40 = arith.constant 0 : index
    %c0_41 = arith.constant 0 : index
    %c0_42 = arith.constant 0 : index
    %34 = vector.load %arg20[%c0_40, %c0_41, %c0_42] : memref<2x10x128xf32, #tpu.memory_space<vmem>>, vector<2x8x128xf32>
    %c0_43 = arith.constant 0 : index
    %c1_44 = arith.constant 1 : index
    %c0_45 = arith.constant 0 : index
    %35 = vector.load %arg20[%c0_43, %c1_44, %c0_45] : memref<2x10x128xf32, #tpu.memory_space<vmem>>, vector<2x8x128xf32>
    %c0_46 = arith.constant 0 : index
    %c2_47 = arith.constant 2 : index
    %c0_48 = arith.constant 0 : index
    %36 = vector.load %arg20[%c0_46, %c2_47, %c0_48] : memref<2x10x128xf32, #tpu.memory_space<vmem>>, vector<2x8x128xf32>
    %37 = tpu.concatenate %34, %35, %36 in 2 : vector<2x8x128xf32>, vector<2x8x128xf32>, vector<2x8x128xf32> -> vector<2x8x384xf32>
    %38 = vector.shape_cast %37 : vector<2x8x384xf32> to vector<16x384xf32>
    %39 = arith.truncf %38 : vector<16x384xf32> to vector<16x384xbf16>
    %cst_49 = arith.constant dense<0.000000e+00> : vector<16x128xf32>
    %40 = tpu.matmul %39, %28, %cst_49 {dimension_numbers = #tpu.dot_dimension_numbers<[1], [0], [0], [1], [0, 0, 1, 1], [], []>} : vector<16x384xbf16>, vector<384x128xbf16>, vector<16x128xf32> -> vector<16x128xf32>
    %41 = vector.shape_cast %40 : vector<16x128xf32> to vector<2x8x128xf32>
    %42 = vector.shape_cast %30 : vector<1x128xf32> to vector<1x1x128xf32>
    %43 = vector.broadcast %42 : vector<1x1x128xf32> to vector<2x8x128xf32>
    %44 = arith.mulf %41, %43 : vector<2x8x128xf32>
    %45 = vector.shape_cast %32 : vector<1x128xf32> to vector<1x1x128xf32>
    %46 = vector.broadcast %45 : vector<1x1x128xf32> to vector<2x8x128xf32>
    %47 = arith.addf %44, %46 : vector<2x8x128xf32>
    %48 = arith.addf %47, %3 : vector<2x8x128xf32>
    %cst_50 = arith.constant 0.000000e+00 : f32
    %49 = vector.broadcast %cst_50 : f32 to vector<2x8x128xf32>
    %50 = arith.maximumf %48, %49 : vector<2x8x128xf32>
    %cst_51 = arith.constant -1.000000e+02 : f32
    %cst_52 = arith.constant 1.000000e+02 : f32
    %51 = vector.broadcast %cst_51 : f32 to vector<2x8x128xf32>
    %52 = arith.maximumf %51, %50 : vector<2x8x128xf32>
    %53 = vector.broadcast %cst_52 : f32 to vector<2x8x128xf32>
    %54 = arith.minimumf %53, %52 : vector<2x8x128xf32>
    %55 = arith.cmpf one, %54, %54 : vector<2x8x128xf32>
    %cst_53 = arith.constant 0.000000e+00 : f32
    %56 = vector.broadcast %cst_53 : f32 to vector<2x8x128xf32>
    %57 = arith.select %55, %56, %54 : vector<2x8x128xi1>, vector<2x8x128xf32>
    %c1_54 = arith.constant 1 : index
    %c0_55 = arith.constant 0 : index
    %c0_56 = arith.constant 0 : index
    %58 = vector.load %arg2[%c1_54, %c0_55, %c0_56] : memref<2x384x128xbf16, #tpu.memory_space<vmem>>, vector<1x384x128xbf16>
    %59 = vector.shape_cast %58 : vector<1x384x128xbf16> to vector<384x128xbf16>
    %c1_57 = arith.constant 1 : index
    %c0_58 = arith.constant 0 : index
    %c0_59 = arith.constant 0 : index
    %60 = vector.load %arg3[%c1_57, %c0_58, %c0_59] : memref<2x1x128xf32, #tpu.memory_space<vmem>>, vector<1x1x128xf32>
    %61 = vector.shape_cast %60 : vector<1x1x128xf32> to vector<1x128xf32>
    %c1_60 = arith.constant 1 : index
    %c0_61 = arith.constant 0 : index
    %c0_62 = arith.constant 0 : index
    %62 = vector.load %arg4[%c1_60, %c0_61, %c0_62] : memref<2x1x128xf32, #tpu.memory_space<vmem>>, vector<1x1x128xf32>
    %63 = vector.shape_cast %62 : vector<1x1x128xf32> to vector<1x128xf32>
    %c0_63 = arith.constant 0 : index
    %c1_64 = arith.constant 1 : index
    %c0_65 = arith.constant 0 : index
    %64 = vector.load %arg20[%c0_63, %c1_64, %c0_65] : memref<2x10x128xf32, #tpu.memory_space<vmem>>, vector<2x8x128xf32>
    tpu.vector_store %arg20[%c0_63, %c1_64, %c0_65], %57 {strides = array<i32>} : memref<2x10x128xf32, #tpu.memory_space<vmem>>, vector<2x8x128xf32>,
    %c0_66 = arith.constant 0 : index
    %c0_67 = arith.constant 0 : index
    %c0_68 = arith.constant 0 : index
    %65 = vector.load %arg20[%c0_66, %c0_67, %c0_68] : memref<2x10x128xf32, #tpu.memory_space<vmem>>, vector<2x8x128xf32>
    %c0_69 = arith.constant 0 : index
    %c1_70 = arith.constant 1 : index
    %c0_71 = arith.constant 0 : index
    %66 = vector.load %arg20[%c0_69, %c1_70, %c0_71] : memref<2x10x128xf32, #tpu.memory_space<vmem>>, vector<2x8x128xf32>
    %c0_72 = arith.constant 0 : index
    %c2_73 = arith.constant 2 : index
    %c0_74 = arith.constant 0 : index
    %67 = vector.load %arg20[%c0_72, %c2_73, %c0_74] : memref<2x10x128xf32, #tpu.memory_space<vmem>>, vector<2x8x128xf32>
    %68 = tpu.concatenate %65, %66, %67 in 2 : vector<2x8x128xf32>, vector<2x8x128xf32>, vector<2x8x128xf32> -> vector<2x8x384xf32>
    %69 = vector.shape_cast %68 : vector<2x8x384xf32> to vector<16x384xf32>
    %70 = arith.truncf %69 : vector<16x384xf32> to vector<16x384xbf16>
    %cst_75 = arith.constant dense<0.000000e+00> : vector<16x128xf32>
    %71 = tpu.matmul %70, %59, %cst_75 {dimension_numbers = #tpu.dot_dimension_numbers<[1], [0], [0], [1], [0, 0, 1, 1], [], []>} : vector<16x384xbf16>, vector<384x128xbf16>, vector<16x128xf32> -> vector<16x128xf32>
    %72 = vector.shape_cast %71 : vector<16x128xf32> to vector<2x8x128xf32>
    %73 = vector.shape_cast %61 : vector<1x128xf32> to vector<1x1x128xf32>
    %74 = vector.broadcast %73 : vector<1x1x128xf32> to vector<2x8x128xf32>
    %75 = arith.mulf %72, %74 : vector<2x8x128xf32>
    %76 = vector.shape_cast %63 : vector<1x128xf32> to vector<1x1x128xf32>
    %77 = vector.broadcast %76 : vector<1x1x128xf32> to vector<2x8x128xf32>
    %78 = arith.addf %75, %77 : vector<2x8x128xf32>
    %cst_76 = arith.constant 0.000000e+00 : f32
    %79 = vector.broadcast %cst_76 : f32 to vector<2x8x128xf32>
    %80 = arith.maximumf %78, %79 : vector<2x8x128xf32>
    %c1_77 = arith.constant 1 : index
    %c0_78 = arith.constant 0 : index
    %c0_79 = arith.constant 0 : index
    %81 = vector.load %arg5[%c1_77, %c0_78, %c0_79] : memref<2x384x128xbf16, #tpu.memory_space<vmem>>, vector<1x384x128xbf16>
    %82 = vector.shape_cast %81 : vector<1x384x128xbf16> to vector<384x128xbf16>
    %c1_80 = arith.constant 1 : index
    %c0_81 = arith.constant 0 : index
    %c0_82 = arith.constant 0 : index
    %83 = vector.load %arg6[%c1_80, %c0_81, %c0_82] : memref<2x1x128xf32, #tpu.memory_space<vmem>>, vector<1x1x128xf32>
    %84 = vector.shape_cast %83 : vector<1x1x128xf32> to vector<1x128xf32>
    %c1_83 = arith.constant 1 : index
    %c0_84 = arith.constant 0 : index
    %c0_85 = arith.constant 0 : index
    %85 = vector.load %arg7[%c1_83, %c0_84, %c0_85] : memref<2x1x128xf32, #tpu.memory_space<vmem>>, vector<1x1x128xf32>
    %86 = vector.shape_cast %85 : vector<1x1x128xf32> to vector<1x128xf32>
    %c0_86 = arith.constant 0 : index
    %c1_87 = arith.constant 1 : index
    %c0_88 = arith.constant 0 : index
    %87 = vector.load %arg20[%c0_86, %c1_87, %c0_88] : memref<2x10x128xf32, #tpu.memory_space<vmem>>, vector<2x8x128xf32>
    tpu.vector_store %arg20[%c0_86, %c1_87, %c0_88], %80 {strides = array<i32>} : memref<2x10x128xf32, #tpu.memory_space<vmem>>, vector<2x8x128xf32>,
    %c0_89 = arith.constant 0 : index
    %c0_90 = arith.constant 0 : index
    %c0_91 = arith.constant 0 : index
    %88 = vector.load %arg20[%c0_89, %c0_90, %c0_91] : memref<2x10x128xf32, #tpu.memory_space<vmem>>, vector<2x8x128xf32>
    %c0_92 = arith.constant 0 : index
    %c1_93 = arith.constant 1 : index
    %c0_94 = arith.constant 0 : index
    %89 = vector.load %arg20[%c0_92, %c1_93, %c0_94] : memref<2x10x128xf32, #tpu.memory_space<vmem>>, vector<2x8x128xf32>
    %c0_95 = arith.constant 0 : index
    %c2_96 = arith.constant 2 : index
    %c0_97 = arith.constant 0 : index
    %90 = vector.load %arg20[%c0_95, %c2_96, %c0_97] : memref<2x10x128xf32, #tpu.memory_space<vmem>>, vector<2x8x128xf32>
    %91 = tpu.concatenate %88, %89, %90 in 2 : vector<2x8x128xf32>, vector<2x8x128xf32>, vector<2x8x128xf32> -> vector<2x8x384xf32>
    %92 = vector.shape_cast %91 : vector<2x8x384xf32> to vector<16x384xf32>
    %93 = arith.truncf %92 : vector<16x384xf32> to vector<16x384xbf16>
    %cst_98 = arith.constant dense<0.000000e+00> : vector<16x128xf32>
    %94 = tpu.matmul %93, %82, %cst_98 {dimension_numbers = #tpu.dot_dimension_numbers<[1], [0], [0], [1], [0, 0, 1, 1], [], []>} : vector<16x384xbf16>, vector<384x128xbf16>, vector<16x128xf32> -> vector<16x128xf32>
    %95 = vector.shape_cast %94 : vector<16x128xf32> to vector<2x8x128xf32>
    %96 = vector.shape_cast %84 : vector<1x128xf32> to vector<1x1x128xf32>
    %97 = vector.broadcast %96 : vector<1x1x128xf32> to vector<2x8x128xf32>
    %98 = arith.mulf %95, %97 : vector<2x8x128xf32>
    %99 = vector.shape_cast %86 : vector<1x128xf32> to vector<1x1x128xf32>
    %100 = vector.broadcast %99 : vector<1x1x128xf32> to vector<2x8x128xf32>
    %101 = arith.addf %98, %100 : vector<2x8x128xf32>
    %102 = arith.addf %101, %57 : vector<2x8x128xf32>
    %cst_99 = arith.constant 0.000000e+00 : f32
    %103 = vector.broadcast %cst_99 : f32 to vector<2x8x128xf32>
    %104 = arith.maximumf %102, %103 : vector<2x8x128xf32>
    %cst_100 = arith.constant -1.000000e+02 : f32
    %cst_101 = arith.constant 1.000000e+02 : f32
    %105 = vector.broadcast %cst_100 : f32 to vector<2x8x128xf32>
    %106 = arith.maximumf %105, %104 : vector<2x8x128xf32>
    %107 = vector.broadcast %cst_101 : f32 to vector<2x8x128xf32>
    %108 = arith.minimumf %107, %106 : vector<2x8x128xf32>
    %109 = arith.cmpf one, %108, %108 : vector<2x8x128xf32>
    %cst_102 = arith.constant 0.000000e+00 : f32
    %110 = vector.broadcast %cst_102 : f32 to vector<2x8x128xf32>
    %111 = arith.select %109, %110, %108 : vector<2x8x128xi1>, vector<2x8x128xf32>
    %112 = vector.shape_cast %111 : vector<2x8x128xf32> to vector<16x128xf32>
    %113 = arith.truncf %112 : vector<16x128xf32> to vector<16x128xbf16>
    %c0_103 = arith.constant 0 : index
    %c0_104 = arith.constant 0 : index
    %114 = vector.load %arg8[%c0_103, %c0_104] : memref<128x64xbf16, #tpu.memory_space<vmem>>, vector<128x64xbf16>
    %cst_105 = arith.constant dense<0.000000e+00> : vector<16x64xf32>
    %115 = tpu.matmul %113, %114, %cst_105 {dimension_numbers = #tpu.dot_dimension_numbers<[1], [0], [0], [1], [0, 0, 1, 1], [], []>} : vector<16x128xbf16>, vector<128x64xbf16>, vector<16x64xf32> -> vector<16x64xf32>
    %c0_106 = arith.constant 0 : index
    %c0_107 = arith.constant 0 : index
    %116 = vector.load %arg9[%c0_106, %c0_107] : memref<1x64xf32, #tpu.memory_space<vmem>>, vector<1x64xf32>
    %117 = vector.broadcast %116 : vector<1x64xf32> to vector<16x64xf32>
    %118 = arith.addf %115, %117 : vector<16x64xf32>
    %c0_108 = arith.constant 0 : index
    %c0_109 = arith.constant 0 : index
    %119 = vector.load %arg21[%c0_108, %c0_109] : memref<16x64xf32, #tpu.memory_space<vmem>>, vector<16x64xf32>
    tpu.vector_store %arg21[%c0_108, %c0_109], %118 {strides = array<i32>} : memref<16x64xf32, #tpu.memory_space<vmem>>, vector<16x64xf32>,
    %c0_110 = arith.constant 0 : index
    %c0_111 = arith.constant 0 : index
    %120 = vector.load %arg21[%c0_110, %c0_111] : memref<16x64xf32, #tpu.memory_space<vmem>>, vector<1x64xf32>
    %121 = vector.extract_strided_slice %120 {offsets = [0, 0], sizes = [1, 32], strides = [1, 1]} : vector<1x64xf32> to vector<1x32xf32>
    %c0_112 = arith.constant 0 : index
    %c0_113 = arith.constant 0 : index
    %122 = vector.load %arg22[%c0_112, %c0_113] : memref<2x256xf32, #tpu.memory_space<vmem>>, vector<1x32xf32>
    tpu.vector_store %arg22[%c0_112, %c0_113], %121 {strides = array<i32>} : memref<2x256xf32, #tpu.memory_space<vmem>>, vector<1x32xf32>,
    %123 = vector.extract_strided_slice %120 {offsets = [0, 32], sizes = [1, 32], strides = [1, 1]} : vector<1x64xf32> to vector<1x32xf32>
    %c0_114 = arith.constant 0 : index
    %c0_115 = arith.constant 0 : index
    %124 = vector.load %arg23[%c0_114, %c0_115] : memref<2x256xf32, #tpu.memory_space<vmem>>, vector<1x32xf32>
    tpu.vector_store %arg23[%c0_114, %c0_115], %123 {strides = array<i32>} : memref<2x256xf32, #tpu.memory_space<vmem>>, vector<1x32xf32>,
    %c1_116 = arith.constant 1 : index
    %c0_117 = arith.constant 0 : index
    %125 = vector.load %arg21[%c1_116, %c0_117] : memref<16x64xf32, #tpu.memory_space<vmem>>, vector<1x64xf32>
    %126 = vector.extract_strided_slice %125 {offsets = [0, 0], sizes = [1, 32], strides = [1, 1]} : vector<1x64xf32> to vector<1x32xf32>
    %c0_118 = arith.constant 0 : index
    %c32 = arith.constant 32 : index
    %127 = vector.load %arg22[%c0_118, %c32] : memref<2x256xf32, #tpu.memory_space<vmem>>, vector<1x32xf32>
    tpu.vector_store %arg22[%c0_118, %c32], %126 {strides = array<i32>} : memref<2x256xf32, #tpu.memory_space<vmem>>, vector<1x32xf32>,
    %128 = vector.extract_strided_slice %125 {offsets = [0, 32], sizes = [1, 32], strides = [1, 1]} : vector<1x64xf32> to vector<1x32xf32>
    %c0_119 = arith.constant 0 : index
    %c32_120 = arith.constant 32 : index
    %129 = vector.load %arg23[%c0_119, %c32_120] : memref<2x256xf32, #tpu.memory_space<vmem>>, vector<1x32xf32>
    tpu.vector_store %arg23[%c0_119, %c32_120], %128 {strides = array<i32>} : memref<2x256xf32, #tpu.memory_space<vmem>>, vector<1x32xf32>,
    %c2_121 = arith.constant 2 : index
    %c0_122 = arith.constant 0 : index
    %130 = vector.load %arg21[%c2_121, %c0_122] : memref<16x64xf32, #tpu.memory_space<vmem>>, vector<1x64xf32>
    %131 = vector.extract_strided_slice %130 {offsets = [0, 0], sizes = [1, 32], strides = [1, 1]} : vector<1x64xf32> to vector<1x32xf32>
    %c0_123 = arith.constant 0 : index
    %c64 = arith.constant 64 : index
    %132 = vector.load %arg22[%c0_123, %c64] : memref<2x256xf32, #tpu.memory_space<vmem>>, vector<1x32xf32>
    tpu.vector_store %arg22[%c0_123, %c64], %131 {strides = array<i32>} : memref<2x256xf32, #tpu.memory_space<vmem>>, vector<1x32xf32>,
    %133 = vector.extract_strided_slice %130 {offsets = [0, 32], sizes = [1, 32], strides = [1, 1]} : vector<1x64xf32> to vector<1x32xf32>
    %c0_124 = arith.constant 0 : index
    %c64_125 = arith.constant 64 : index
    %134 = vector.load %arg23[%c0_124, %c64_125] : memref<2x256xf32, #tpu.memory_space<vmem>>, vector<1x32xf32>
    tpu.vector_store %arg23[%c0_124, %c64_125], %133 {strides = array<i32>} : memref<2x256xf32, #tpu.memory_space<vmem>>, vector<1x32xf32>,
    %c3 = arith.constant 3 : index
    %c0_126 = arith.constant 0 : index
    %135 = vector.load %arg21[%c3, %c0_126] : memref<16x64xf32, #tpu.memory_space<vmem>>, vector<1x64xf32>
    %136 = vector.extract_strided_slice %135 {offsets = [0, 0], sizes = [1, 32], strides = [1, 1]} : vector<1x64xf32> to vector<1x32xf32>
    %c0_127 = arith.constant 0 : index
    %c96 = arith.constant 96 : index
    %137 = vector.load %arg22[%c0_127, %c96] : memref<2x256xf32, #tpu.memory_space<vmem>>, vector<1x32xf32>
    tpu.vector_store %arg22[%c0_127, %c96], %136 {strides = array<i32>} : memref<2x256xf32, #tpu.memory_space<vmem>>, vector<1x32xf32>,
    %138 = vector.extract_strided_slice %135 {offsets = [0, 32], sizes = [1, 32], strides = [1, 1]} : vector<1x64xf32> to vector<1x32xf32>
    %c0_128 = arith.constant 0 : index
    %c96_129 = arith.constant 96 : index
    %139 = vector.load %arg23[%c0_128, %c96_129] : memref<2x256xf32, #tpu.memory_space<vmem>>, vector<1x32xf32>
    tpu.vector_store %arg23[%c0_128, %c96_129], %138 {strides = array<i32>} : memref<2x256xf32, #tpu.memory_space<vmem>>, vector<1x32xf32>,
    %c4 = arith.constant 4 : index
    %c0_130 = arith.constant 0 : index
    %140 = vector.load %arg21[%c4, %c0_130] : memref<16x64xf32, #tpu.memory_space<vmem>>, vector<1x64xf32>
    %141 = vector.extract_strided_slice %140 {offsets = [0, 0], sizes = [1, 32], strides = [1, 1]} : vector<1x64xf32> to vector<1x32xf32>
    %c0_131 = arith.constant 0 : index
    %c128 = arith.constant 128 : index
    %142 = vector.load %arg22[%c0_131, %c128] : memref<2x256xf32, #tpu.memory_space<vmem>>, vector<1x32xf32>
    tpu.vector_store %arg22[%c0_131, %c128], %141 {strides = array<i32>} : memref<2x256xf32, #tpu.memory_space<vmem>>, vector<1x32xf32>,
    %143 = vector.extract_strided_slice %140 {offsets = [0, 32], sizes = [1, 32], strides = [1, 1]} : vector<1x64xf32> to vector<1x32xf32>
    %c0_132 = arith.constant 0 : index
    %c128_133 = arith.constant 128 : index
    %144 = vector.load %arg23[%c0_132, %c128_133] : memref<2x256xf32, #tpu.memory_space<vmem>>, vector<1x32xf32>
    tpu.vector_store %arg23[%c0_132, %c128_133], %143 {strides = array<i32>} : memref<2x256xf32, #tpu.memory_space<vmem>>, vector<1x32xf32>,
    %c5 = arith.constant 5 : index
    %c0_134 = arith.constant 0 : index
    %145 = vector.load %arg21[%c5, %c0_134] : memref<16x64xf32, #tpu.memory_space<vmem>>, vector<1x64xf32>
    %146 = vector.extract_strided_slice %145 {offsets = [0, 0], sizes = [1, 32], strides = [1, 1]} : vector<1x64xf32> to vector<1x32xf32>
    %c0_135 = arith.constant 0 : index
    %c160 = arith.constant 160 : index
    %147 = vector.load %arg22[%c0_135, %c160] : memref<2x256xf32, #tpu.memory_space<vmem>>, vector<1x32xf32>
    tpu.vector_store %arg22[%c0_135, %c160], %146 {strides = array<i32>} : memref<2x256xf32, #tpu.memory_space<vmem>>, vector<1x32xf32>,
    %148 = vector.extract_strided_slice %145 {offsets = [0, 32], sizes = [1, 32], strides = [1, 1]} : vector<1x64xf32> to vector<1x32xf32>
    %c0_136 = arith.constant 0 : index
    %c160_137 = arith.constant 160 : index
    %149 = vector.load %arg23[%c0_136, %c160_137] : memref<2x256xf32, #tpu.memory_space<vmem>>, vector<1x32xf32>
    tpu.vector_store %arg23[%c0_136, %c160_137], %148 {strides = array<i32>} : memref<2x256xf32, #tpu.memory_space<vmem>>, vector<1x32xf32>,
    %c6 = arith.constant 6 : index
    %c0_138 = arith.constant 0 : index
    %150 = vector.load %arg21[%c6, %c0_138] : memref<16x64xf32, #tpu.memory_space<vmem>>, vector<1x64xf32>
    %151 = vector.extract_strided_slice %150 {offsets = [0, 0], sizes = [1, 32], strides = [1, 1]} : vector<1x64xf32> to vector<1x32xf32>
    %c0_139 = arith.constant 0 : index
    %c192 = arith.constant 192 : index
    %152 = vector.load %arg22[%c0_139, %c192] : memref<2x256xf32, #tpu.memory_space<vmem>>, vector<1x32xf32>
    tpu.vector_store %arg22[%c0_139, %c192], %151 {strides = array<i32>} : memref<2x256xf32, #tpu.memory_space<vmem>>, vector<1x32xf32>,
    %153 = vector.extract_strided_slice %150 {offsets = [0, 32], sizes = [1, 32], strides = [1, 1]} : vector<1x64xf32> to vector<1x32xf32>
    %c0_140 = arith.constant 0 : index
    %c192_141 = arith.constant 192 : index
    %154 = vector.load %arg23[%c0_140, %c192_141] : memref<2x256xf32, #tpu.memory_space<vmem>>, vector<1x32xf32>
    tpu.vector_store %arg23[%c0_140, %c192_141], %153 {strides = array<i32>} : memref<2x256xf32, #tpu.memory_space<vmem>>, vector<1x32xf32>,
    %c7 = arith.constant 7 : index
    %c0_142 = arith.constant 0 : index
    %155 = vector.load %arg21[%c7, %c0_142] : memref<16x64xf32, #tpu.memory_space<vmem>>, vector<1x64xf32>
    %156 = vector.extract_strided_slice %155 {offsets = [0, 0], sizes = [1, 32], strides = [1, 1]} : vector<1x64xf32> to vector<1x32xf32>
    %c0_143 = arith.constant 0 : index
    %c224 = arith.constant 224 : index
    %157 = vector.load %arg22[%c0_143, %c224] : memref<2x256xf32, #tpu.memory_space<vmem>>, vector<1x32xf32>
    tpu.vector_store %arg22[%c0_143, %c224], %156 {strides = array<i32>} : memref<2x256xf32, #tpu.memory_space<vmem>>, vector<1x32xf32>,
    %158 = vector.extract_strided_slice %155 {offsets = [0, 32], sizes = [1, 32], strides = [1, 1]} : vector<1x64xf32> to vector<1x32xf32>
    %c0_144 = arith.constant 0 : index
    %c224_145 = arith.constant 224 : index
    %159 = vector.load %arg23[%c0_144, %c224_145] : memref<2x256xf32, #tpu.memory_space<vmem>>, vector<1x32xf32>
    tpu.vector_store %arg23[%c0_144, %c224_145], %158 {strides = array<i32>} : memref<2x256xf32, #tpu.memory_space<vmem>>, vector<1x32xf32>,
    %c8 = arith.constant 8 : index
    %c0_146 = arith.constant 0 : index
    %160 = vector.load %arg21[%c8, %c0_146] : memref<16x64xf32, #tpu.memory_space<vmem>>, vector<1x64xf32>
    %161 = vector.extract_strided_slice %160 {offsets = [0, 0], sizes = [1, 32], strides = [1, 1]} : vector<1x64xf32> to vector<1x32xf32>
    %c1_147 = arith.constant 1 : index
    %c0_148 = arith.constant 0 : index
    %162 = vector.load %arg22[%c1_147, %c0_148] : memref<2x256xf32, #tpu.memory_space<vmem>>, vector<1x32xf32>
    tpu.vector_store %arg22[%c1_147, %c0_148], %161 {strides = array<i32>} : memref<2x256xf32, #tpu.memory_space<vmem>>, vector<1x32xf32>,
    %163 = vector.extract_strided_slice %160 {offsets = [0, 32], sizes = [1, 32], strides = [1, 1]} : vector<1x64xf32> to vector<1x32xf32>
    %c1_149 = arith.constant 1 : index
    %c0_150 = arith.constant 0 : index
    %164 = vector.load %arg23[%c1_149, %c0_150] : memref<2x256xf32, #tpu.memory_space<vmem>>, vector<1x32xf32>
    tpu.vector_store %arg23[%c1_149, %c0_150], %163 {strides = array<i32>} : memref<2x256xf32, #tpu.memory_space<vmem>>, vector<1x32xf32>,
    %c9_151 = arith.constant 9 : index
    %c0_152 = arith.constant 0 : index
    %165 = vector.load %arg21[%c9_151, %c0_152] : memref<16x64xf32, #tpu.memory_space<vmem>>, vector<1x64xf32>
    %166 = vector.extract_strided_slice %165 {offsets = [0, 0], sizes = [1, 32], strides = [1, 1]} : vector<1x64xf32> to vector<1x32xf32>
    %c1_153 = arith.constant 1 : index
    %c32_154 = arith.constant 32 : index
    %167 = vector.load %arg22[%c1_153, %c32_154] : memref<2x256xf32, #tpu.memory_space<vmem>>, vector<1x32xf32>
    tpu.vector_store %arg22[%c1_153, %c32_154], %166 {strides = array<i32>} : memref<2x256xf32, #tpu.memory_space<vmem>>, vector<1x32xf32>,
    %168 = vector.extract_strided_slice %165 {offsets = [0, 32], sizes = [1, 32], strides = [1, 1]} : vector<1x64xf32> to vector<1x32xf32>
    %c1_155 = arith.constant 1 : index
    %c32_156 = arith.constant 32 : index
    %169 = vector.load %arg23[%c1_155, %c32_156] : memref<2x256xf32, #tpu.memory_space<vmem>>, vector<1x32xf32>
    tpu.vector_store %arg23[%c1_155, %c32_156], %168 {strides = array<i32>} : memref<2x256xf32, #tpu.memory_space<vmem>>, vector<1x32xf32>,
    %c10 = arith.constant 10 : index
    %c0_157 = arith.constant 0 : index
    %170 = vector.load %arg21[%c10, %c0_157] : memref<16x64xf32, #tpu.memory_space<vmem>>, vector<1x64xf32>
    %171 = vector.extract_strided_slice %170 {offsets = [0, 0], sizes = [1, 32], strides = [1, 1]} : vector<1x64xf32> to vector<1x32xf32>
    %c1_158 = arith.constant 1 : index
    %c64_159 = arith.constant 64 : index
    %172 = vector.load %arg22[%c1_158, %c64_159] : memref<2x256xf32, #tpu.memory_space<vmem>>, vector<1x32xf32>
    tpu.vector_store %arg22[%c1_158, %c64_159], %171 {strides = array<i32>} : memref<2x256xf32, #tpu.memory_space<vmem>>, vector<1x32xf32>,
    %173 = vector.extract_strided_slice %170 {offsets = [0, 32], sizes = [1, 32], strides = [1, 1]} : vector<1x64xf32> to vector<1x32xf32>
    %c1_160 = arith.constant 1 : index
    %c64_161 = arith.constant 64 : index
    %174 = vector.load %arg23[%c1_160, %c64_161] : memref<2x256xf32, #tpu.memory_space<vmem>>, vector<1x32xf32>
    tpu.vector_store %arg23[%c1_160, %c64_161], %173 {strides = array<i32>} : memref<2x256xf32, #tpu.memory_space<vmem>>, vector<1x32xf32>,
    %c11 = arith.constant 11 : index
    %c0_162 = arith.constant 0 : index
    %175 = vector.load %arg21[%c11, %c0_162] : memref<16x64xf32, #tpu.memory_space<vmem>>, vector<1x64xf32>
    %176 = vector.extract_strided_slice %175 {offsets = [0, 0], sizes = [1, 32], strides = [1, 1]} : vector<1x64xf32> to vector<1x32xf32>
    %c1_163 = arith.constant 1 : index
    %c96_164 = arith.constant 96 : index
    %177 = vector.load %arg22[%c1_163, %c96_164] : memref<2x256xf32, #tpu.memory_space<vmem>>, vector<1x32xf32>
    tpu.vector_store %arg22[%c1_163, %c96_164], %176 {strides = array<i32>} : memref<2x256xf32, #tpu.memory_space<vmem>>, vector<1x32xf32>,
    %178 = vector.extract_strided_slice %175 {offsets = [0, 32], sizes = [1, 32], strides = [1, 1]} : vector<1x64xf32> to vector<1x32xf32>
    %c1_165 = arith.constant 1 : index
    %c96_166 = arith.constant 96 : index
    %179 = vector.load %arg23[%c1_165, %c96_166] : memref<2x256xf32, #tpu.memory_space<vmem>>, vector<1x32xf32>
    tpu.vector_store %arg23[%c1_165, %c96_166], %178 {strides = array<i32>} : memref<2x256xf32, #tpu.memory_space<vmem>>, vector<1x32xf32>,
    %c12 = arith.constant 12 : index
    %c0_167 = arith.constant 0 : index
    %180 = vector.load %arg21[%c12, %c0_167] : memref<16x64xf32, #tpu.memory_space<vmem>>, vector<1x64xf32>
    %181 = vector.extract_strided_slice %180 {offsets = [0, 0], sizes = [1, 32], strides = [1, 1]} : vector<1x64xf32> to vector<1x32xf32>
    %c1_168 = arith.constant 1 : index
    %c128_169 = arith.constant 128 : index
    %182 = vector.load %arg22[%c1_168, %c128_169] : memref<2x256xf32, #tpu.memory_space<vmem>>, vector<1x32xf32>
    tpu.vector_store %arg22[%c1_168, %c128_169], %181 {strides = array<i32>} : memref<2x256xf32, #tpu.memory_space<vmem>>, vector<1x32xf32>,
    %183 = vector.extract_strided_slice %180 {offsets = [0, 32], sizes = [1, 32], strides = [1, 1]} : vector<1x64xf32> to vector<1x32xf32>
    %c1_170 = arith.constant 1 : index
    %c128_171 = arith.constant 128 : index
    %184 = vector.load %arg23[%c1_170, %c128_171] : memref<2x256xf32, #tpu.memory_space<vmem>>, vector<1x32xf32>
    tpu.vector_store %arg23[%c1_170, %c128_171], %183 {strides = array<i32>} : memref<2x256xf32, #tpu.memory_space<vmem>>, vector<1x32xf32>,
    %c13 = arith.constant 13 : index
    %c0_172 = arith.constant 0 : index
    %185 = vector.load %arg21[%c13, %c0_172] : memref<16x64xf32, #tpu.memory_space<vmem>>, vector<1x64xf32>
    %186 = vector.extract_strided_slice %185 {offsets = [0, 0], sizes = [1, 32], strides = [1, 1]} : vector<1x64xf32> to vector<1x32xf32>
    %c1_173 = arith.constant 1 : index
    %c160_174 = arith.constant 160 : index
    %187 = vector.load %arg22[%c1_173, %c160_174] : memref<2x256xf32, #tpu.memory_space<vmem>>, vector<1x32xf32>
    tpu.vector_store %arg22[%c1_173, %c160_174], %186 {strides = array<i32>} : memref<2x256xf32, #tpu.memory_space<vmem>>, vector<1x32xf32>,
    %188 = vector.extract_strided_slice %185 {offsets = [0, 32], sizes = [1, 32], strides = [1, 1]} : vector<1x64xf32> to vector<1x32xf32>
    %c1_175 = arith.constant 1 : index
    %c160_176 = arith.constant 160 : index
    %189 = vector.load %arg23[%c1_175, %c160_176] : memref<2x256xf32, #tpu.memory_space<vmem>>, vector<1x32xf32>
    tpu.vector_store %arg23[%c1_175, %c160_176], %188 {strides = array<i32>} : memref<2x256xf32, #tpu.memory_space<vmem>>, vector<1x32xf32>,
    %c14 = arith.constant 14 : index
    %c0_177 = arith.constant 0 : index
    %190 = vector.load %arg21[%c14, %c0_177] : memref<16x64xf32, #tpu.memory_space<vmem>>, vector<1x64xf32>
    %191 = vector.extract_strided_slice %190 {offsets = [0, 0], sizes = [1, 32], strides = [1, 1]} : vector<1x64xf32> to vector<1x32xf32>
    %c1_178 = arith.constant 1 : index
    %c192_179 = arith.constant 192 : index
    %192 = vector.load %arg22[%c1_178, %c192_179] : memref<2x256xf32, #tpu.memory_space<vmem>>, vector<1x32xf32>
    tpu.vector_store %arg22[%c1_178, %c192_179], %191 {strides = array<i32>} : memref<2x256xf32, #tpu.memory_space<vmem>>, vector<1x32xf32>,
    %193 = vector.extract_strided_slice %190 {offsets = [0, 32], sizes = [1, 32], strides = [1, 1]} : vector<1x64xf32> to vector<1x32xf32>
    %c1_180 = arith.constant 1 : index
    %c192_181 = arith.constant 192 : index
    %194 = vector.load %arg23[%c1_180, %c192_181] : memref<2x256xf32, #tpu.memory_space<vmem>>, vector<1x32xf32>
    tpu.vector_store %arg23[%c1_180, %c192_181], %193 {strides = array<i32>} : memref<2x256xf32, #tpu.memory_space<vmem>>, vector<1x32xf32>,
    %c15 = arith.constant 15 : index
    %c0_182 = arith.constant 0 : index
    %195 = vector.load %arg21[%c15, %c0_182] : memref<16x64xf32, #tpu.memory_space<vmem>>, vector<1x64xf32>
    %196 = vector.extract_strided_slice %195 {offsets = [0, 0], sizes = [1, 32], strides = [1, 1]} : vector<1x64xf32> to vector<1x32xf32>
    %c1_183 = arith.constant 1 : index
    %c224_184 = arith.constant 224 : index
    %197 = vector.load %arg22[%c1_183, %c224_184] : memref<2x256xf32, #tpu.memory_space<vmem>>, vector<1x32xf32>
    tpu.vector_store %arg22[%c1_183, %c224_184], %196 {strides = array<i32>} : memref<2x256xf32, #tpu.memory_space<vmem>>, vector<1x32xf32>,
    %198 = vector.extract_strided_slice %195 {offsets = [0, 32], sizes = [1, 32], strides = [1, 1]} : vector<1x64xf32> to vector<1x32xf32>
    %c1_185 = arith.constant 1 : index
    %c224_186 = arith.constant 224 : index
    %199 = vector.load %arg23[%c1_185, %c224_186] : memref<2x256xf32, #tpu.memory_space<vmem>>, vector<1x32xf32>
    tpu.vector_store %arg23[%c1_185, %c224_186], %198 {strides = array<i32>} : memref<2x256xf32, #tpu.memory_space<vmem>>, vector<1x32xf32>,
    %c0_187 = arith.constant 0 : index
    %c0_188 = arith.constant 0 : index
    %200 = vector.load %arg22[%c0_187, %c0_188] : memref<2x256xf32, #tpu.memory_space<vmem>>, vector<2x256xf32>
    %201 = arith.truncf %200 : vector<2x256xf32> to vector<2x256xbf16>
    %c0_189 = arith.constant 0 : index
    %c0_190 = arith.constant 0 : index
    %202 = vector.load %arg10[%c0_189, %c0_190] : memref<256x32xbf16, #tpu.memory_space<vmem>>, vector<256x32xbf16>
    %cst_191 = arith.constant dense<0.000000e+00> : vector<2x32xf32>
    %203 = tpu.matmul %201, %202, %cst_191 {dimension_numbers = #tpu.dot_dimension_numbers<[1], [0], [0], [1], [0, 0, 1, 1], [], []>} : vector<2x256xbf16>, vector<256x32xbf16>, vector<2x32xf32> -> vector<2x32xf32>
    %c0_192 = arith.constant 0 : index
    %c0_193 = arith.constant 0 : index
    %204 = vector.load %arg11[%c0_192, %c0_193] : memref<1x32xf32, #tpu.memory_space<vmem>>, vector<1x32xf32>
    %205 = vector.broadcast %204 : vector<1x32xf32> to vector<2x32xf32>
    %206 = arith.addf %203, %205 : vector<2x32xf32>
    %cst_194 = arith.constant 0.000000e+00 : f32
    %207 = vector.broadcast %cst_194 : f32 to vector<2x32xf32>
    %208 = arith.minimumf %206, %207 : vector<2x32xf32>
    %cst_195 = arith.constant 5.000000e-01 : f32
    %209 = vector.broadcast %cst_195 : f32 to vector<2x32xf32>
    %210 = arith.mulf %209, %208 : vector<2x32xf32>
    %211 = math.tanh %210 : vector<2x32xf32>
    %212 = math.exp %208 : vector<2x32xf32>
    %cst_196 = arith.constant 1.000000e+00 : f32
    %213 = vector.broadcast %cst_196 : f32 to vector<2x32xf32>
    %214 = arith.addf %212, %213 : vector<2x32xf32>
    %215 = arith.mulf %211, %214 : vector<2x32xf32>
    %cst_197 = arith.constant 0.000000e+00 : f32
    %216 = vector.broadcast %cst_197 : f32 to vector<2x32xf32>
    %217 = arith.cmpf ogt, %206, %216 : vector<2x32xf32>
    %218 = arith.select %217, %206, %215 : vector<2x32xi1>, vector<2x32xf32>
    %219 = arith.truncf %218 : vector<2x32xf32> to vector<2x32xbf16>
    %c0_198 = arith.constant 0 : index
    %c0_199 = arith.constant 0 : index
    %220 = vector.load %arg12[%c0_198, %c0_199] : memref<32x21xbf16, #tpu.memory_space<vmem>>, vector<32x21xbf16>
    %cst_200 = arith.constant dense<0.000000e+00> : vector<2x21xf32>
    %221 = tpu.matmul %219, %220, %cst_200 {dimension_numbers = #tpu.dot_dimension_numbers<[1], [0], [0], [1], [0, 0, 1, 1], [], []>} : vector<2x32xbf16>, vector<32x21xbf16>, vector<2x21xf32> -> vector<2x21xf32>
    %c0_201 = arith.constant 0 : index
    %c0_202 = arith.constant 0 : index
    %222 = vector.load %arg13[%c0_201, %c0_202] : memref<1x21xf32, #tpu.memory_space<vmem>>, vector<1x21xf32>
    %223 = vector.broadcast %222 : vector<1x21xf32> to vector<2x21xf32>
    %224 = arith.addf %221, %223 : vector<2x21xf32>
    %c0_203 = arith.constant 0 : index
    %c0_204 = arith.constant 0 : index
    %225 = vector.load %arg23[%c0_203, %c0_204] : memref<2x256xf32, #tpu.memory_space<vmem>>, vector<2x256xf32>
    %226 = arith.truncf %225 : vector<2x256xf32> to vector<2x256xbf16>
    %c0_205 = arith.constant 0 : index
    %c0_206 = arith.constant 0 : index
    %227 = vector.load %arg14[%c0_205, %c0_206] : memref<256x32xbf16, #tpu.memory_space<vmem>>, vector<256x32xbf16>
    %cst_207 = arith.constant dense<0.000000e+00> : vector<2x32xf32>
    %228 = tpu.matmul %226, %227, %cst_207 {dimension_numbers = #tpu.dot_dimension_numbers<[1], [0], [0], [1], [0, 0, 1, 1], [], []>} : vector<2x256xbf16>, vector<256x32xbf16>, vector<2x32xf32> -> vector<2x32xf32>
    %c0_208 = arith.constant 0 : index
    %c0_209 = arith.constant 0 : index
    %229 = vector.load %arg15[%c0_208, %c0_209] : memref<1x32xf32, #tpu.memory_space<vmem>>, vector<1x32xf32>
    %230 = vector.broadcast %229 : vector<1x32xf32> to vector<2x32xf32>
    %231 = arith.addf %228, %230 : vector<2x32xf32>
    %cst_210 = arith.constant 0.000000e+00 : f32
    %232 = vector.broadcast %cst_210 : f32 to vector<2x32xf32>
    %233 = arith.minimumf %231, %232 : vector<2x32xf32>
    %cst_211 = arith.constant 5.000000e-01 : f32
    %234 = vector.broadcast %cst_211 : f32 to vector<2x32xf32>
    %235 = arith.mulf %234, %233 : vector<2x32xf32>
    %236 = math.tanh %235 : vector<2x32xf32>
    %237 = math.exp %233 : vector<2x32xf32>
    %cst_212 = arith.constant 1.000000e+00 : f32
    %238 = vector.broadcast %cst_212 : f32 to vector<2x32xf32>
    %239 = arith.addf %237, %238 : vector<2x32xf32>
    %240 = arith.mulf %236, %239 : vector<2x32xf32>
    %cst_213 = arith.constant 0.000000e+00 : f32
    %241 = vector.broadcast %cst_213 : f32 to vector<2x32xf32>
    %242 = arith.cmpf ogt, %231, %241 : vector<2x32xf32>
    %243 = arith.select %242, %231, %240 : vector<2x32xi1>, vector<2x32xf32>
    %244 = arith.truncf %243 : vector<2x32xf32> to vector<2x32xbf16>
    %c0_214 = arith.constant 0 : index
    %c0_215 = arith.constant 0 : index
    %245 = vector.load %arg16[%c0_214, %c0_215] : memref<32x6xbf16, #tpu.memory_space<vmem>>, vector<32x6xbf16>
    %cst_216 = arith.constant dense<0.000000e+00> : vector<2x6xf32>
    %246 = tpu.matmul %244, %245, %cst_216 {dimension_numbers = #tpu.dot_dimension_numbers<[1], [0], [0], [1], [0, 0, 1, 1], [], []>} : vector<2x32xbf16>, vector<32x6xbf16>, vector<2x6xf32> -> vector<2x6xf32>
    %c0_217 = arith.constant 0 : index
    %c0_218 = arith.constant 0 : index
    %247 = vector.load %arg17[%c0_217, %c0_218] : memref<1x6xf32, #tpu.memory_space<vmem>>, vector<1x6xf32>
    %248 = vector.broadcast %247 : vector<1x6xf32> to vector<2x6xf32>
    %249 = arith.addf %246, %248 : vector<2x6xf32>
    %c0_219 = arith.constant 0 : index
    %c0_220 = arith.constant 0 : index
    %250 = vector.load %arg18[%c0_219, %c0_220] : memref<2x6xf32, #tpu.memory_space<vmem>>, vector<2x6xf32>
    tpu.vector_store %arg18[%c0_219, %c0_220], %249 {strides = array<i32>} : memref<2x6xf32, #tpu.memory_space<vmem>>, vector<2x6xf32>,
    %c0_221 = arith.constant 0 : index
    %c0_222 = arith.constant 0 : index
    %251 = vector.load %arg19[%c0_221, %c0_222] : memref<2x21xf32, #tpu.memory_space<vmem>>, vector<2x21xf32>
    tpu.vector_store %arg19[%c0_221, %c0_222], %224 {strides = array<i32>} : memref<2x21xf32, #tpu.memory_space<vmem>>, vector<2x21xf32>,
    return
  }
  func.func @transform_0(%arg0: i32) -> (i32, i32, i32) {
    %c0_i32 = arith.constant 0 : i32
    %c0_i32_0 = arith.constant 0 : i32
    %c0_i32_1 = arith.constant 0 : i32
    %c0_i32_2 = arith.constant 0 : i32
    return %c0_i32, %c0_i32_0, %c0_i32_1 : i32, i32, i32
  }
  func.func @transform_1(%arg0: i32) -> (i32, i32, i32) {
    %c0_i32 = arith.constant 0 : i32
    %c0_i32_0 = arith.constant 0 : i32
    %c0_i32_1 = arith.constant 0 : i32
    %c0_i32_2 = arith.constant 0 : i32
    return %c0_i32, %c0_i32_0, %c0_i32_1 : i32, i32, i32
  }
  func.func @transform_2(%arg0: i32) -> (i32, i32, i32) {
    %c0_i32 = arith.constant 0 : i32
    %c0_i32_0 = arith.constant 0 : i32
    %c0_i32_1 = arith.constant 0 : i32
    %c0_i32_2 = arith.constant 0 : i32
    return %c0_i32, %c0_i32_0, %c0_i32_1 : i32, i32, i32
  }
  func.func @transform_3(%arg0: i32) -> (i32, i32, i32) {
    %c0_i32 = arith.constant 0 : i32
    %c0_i32_0 = arith.constant 0 : i32
    %c0_i32_1 = arith.constant 0 : i32
    %c0_i32_2 = arith.constant 0 : i32
    return %c0_i32, %c0_i32_0, %c0_i32_1 : i32, i32, i32
  }
  func.func @transform_4(%arg0: i32) -> (i32, i32, i32) {
    %c0_i32 = arith.constant 0 : i32
    %c0_i32_0 = arith.constant 0 : i32
    %c0_i32_1 = arith.constant 0 : i32
    %c0_i32_2 = arith.constant 0 : i32
    return %c0_i32, %c0_i32_0, %c0_i32_1 : i32, i32, i32
  }
  func.func @transform_5(%arg0: i32) -> (i32, i32, i32) {
    %c0_i32 = arith.constant 0 : i32
    %c0_i32_0 = arith.constant 0 : i32
    %c0_i32_1 = arith.constant 0 : i32
    %c0_i32_2 = arith.constant 0 : i32
    return %c0_i32, %c0_i32_0, %c0_i32_1 : i32, i32, i32
  }
  func.func @transform_6(%arg0: i32) -> (i32, i32, i32) {
    %c0_i32 = arith.constant 0 : i32
    %c0_i32_0 = arith.constant 0 : i32
    %c0_i32_1 = arith.constant 0 : i32
    %c0_i32_2 = arith.constant 0 : i32
    return %c0_i32, %c0_i32_0, %c0_i32_1 : i32, i32, i32
  }
  func.func @transform_7(%arg0: i32) -> (i32, i32) {
    %c0_i32 = arith.constant 0 : i32
    %c0_i32_0 = arith.constant 0 : i32
    %c0_i32_1 = arith.constant 0 : i32
    return %c0_i32, %c0_i32_0 : i32, i32
  }
  func.func @transform_8(%arg0: i32) -> (i32, i32) {
    %c0_i32 = arith.constant 0 : i32
    %c0_i32_0 = arith.constant 0 : i32
    %c0_i32_1 = arith.constant 0 : i32
    return %c0_i32, %c0_i32_0 : i32, i32
  }
  func.func @transform_9(%arg0: i32) -> (i32, i32) {
    %c0_i32 = arith.constant 0 : i32
    %c0_i32_0 = arith.constant 0 : i32
    %c0_i32_1 = arith.constant 0 : i32
    return %c0_i32, %c0_i32_0 : i32, i32
  }
  func.func @transform_10(%arg0: i32) -> (i32, i32) {
    %c0_i32 = arith.constant 0 : i32
    %c0_i32_0 = arith.constant 0 : i32
    %c0_i32_1 = arith.constant 0 : i32
    return %c0_i32, %c0_i32_0 : i32, i32
  }
  func.func @transform_11(%arg0: i32) -> (i32, i32) {
    %c0_i32 = arith.constant 0 : i32
    %c0_i32_0 = arith.constant 0 : i32
    %c0_i32_1 = arith.constant 0 : i32
    return %c0_i32, %c0_i32_0 : i32, i32
  }
  func.func @transform_12(%arg0: i32) -> (i32, i32) {
    %c0_i32 = arith.constant 0 : i32
    %c0_i32_0 = arith.constant 0 : i32
    %c0_i32_1 = arith.constant 0 : i32
    return %c0_i32, %c0_i32_0 : i32, i32
  }
  func.func @transform_13(%arg0: i32) -> (i32, i32) {
    %c0_i32 = arith.constant 0 : i32
    %c0_i32_0 = arith.constant 0 : i32
    %c0_i32_1 = arith.constant 0 : i32
    return %c0_i32, %c0_i32_0 : i32, i32
  }
  func.func @transform_14(%arg0: i32) -> (i32, i32) {
    %c0_i32 = arith.constant 0 : i32
    %c0_i32_0 = arith.constant 0 : i32
    %c0_i32_1 = arith.constant 0 : i32
    return %c0_i32, %c0_i32_0 : i32, i32
  }
  func.func @transform_15(%arg0: i32) -> (i32, i32) {
    %c0_i32 = arith.constant 0 : i32
    %c0_i32_0 = arith.constant 0 : i32
    %c0_i32_1 = arith.constant 0 : i32
    return %c0_i32, %c0_i32_0 : i32, i32
  }
  func.func @transform_16(%arg0: i32) -> (i32, i32) {
    %c0_i32 = arith.constant 0 : i32
    %c0_i32_0 = arith.constant 0 : i32
    %c0_i32_1 = arith.constant 0 : i32
    return %c0_i32, %c0_i32_0 : i32, i32
  }
  func.func @transform_17(%arg0: i32) -> (i32, i32) {
    %c0_i32 = arith.constant 0 : i32
    %c0_i32_0 = arith.constant 0 : i32
    %c0_i32_1 = arith.constant 0 : i32
    return %c0_i32, %c0_i32_0 : i32, i32
  }
  func.func @transform_18(%arg0: i32) -> (i32, i32) {
    %c0_i32 = arith.constant 0 : i32
    %c0_i32_0 = arith.constant 0 : i32
    %c0_i32_1 = arith.constant 0 : i32
    return %c0_i32, %c0_i32_0 : i32, i32
  }
}

</mosaic_0001>

<bundles_post_ra>
// kernel: prediction_network_forward.1
= control target key start
LH: loop header
LB: loop body
LE: loop exit
PB: predicated region body
PF: predicated region fallthrough
CT: control target
= control target key end

     0   :  { %s3659_s0 = inlined_call_operand.vmem [shape: f32[2,8,128], index: 0, kind: input, shape index: {}]   ;;  %s3660_s1 = inlined_call_operand.vmem [shape: bf16[2,384,128], index: 1, kind: input, shape index: {}]   ;;  %s3661_s2 = inlined_call_operand.vmem [shape: f32[2,1,128], index: 2, kind: input, shape index: {}]   ;;  %s3662_s3 = inlined_call_operand.vmem [shape: f32[2,1,128], index: 3, kind: input, shape index: {}]   ;;  %s3663_s4 = inlined_call_operand.hbm [shape: bf16[2,384,128], index: 4, kind: input, shape index: {}]   ;;  %s3664_s5 = inlined_call_operand.vmem [shape: f32[2,1,128], index: 5, kind: input, shape index: {}]   ;;  %s3665_s6 = inlined_call_operand.vmem [shape: f32[2,1,128], index: 6, kind: input, shape index: {}]   ;;  %s3666_s7 = inlined_call_operand.vmem [shape: bf16[128,64], index: 7, kind: input, shape index: {}]   ;;  %s3667_s8 = inlined_call_operand.vmem [shape: f32[1,64], index: 8, kind: input, shape index: {}]   ;;  %s3668_s9 = inlined_call_operand.vmem [shape: bf16[256,32], index: 9, kind: input, shape index: {}]   ;;  %s3669_s10 = inlined_call_operand.vmem [shape: f32[1,32], index: 10, kind: input, shape index: {}]   ;;  %s3670_s11 = inlined_call_operand.vmem [shape: bf16[32,21], index: 11, kind: input, shape index: {}]   ;;  %s3671_s12 = inlined_call_operand.vmem [shape: f32[1,21], index: 12, kind: input, shape index: {}]   ;;  %s3672_s13 = inlined_call_operand.vmem [shape: bf16[256,32], index: 13, kind: input, shape index: {}]   ;;  %s3673_s14 = inlined_call_operand.vmem [shape: f32[1,32], index: 14, kind: input, shape index: {}]   ;;  %s3674_s15 = inlined_call_operand.vmem [shape: bf16[32,6], index: 15, kind: input, shape index: {}]   ;;  %s3675_s16 = inlined_call_operand.vmem [shape: f32[1,6], index: 16, kind: input, shape index: {}]   ;;  %s3676_s17 = inlined_call_operand.hbm [shape: f32[2,6], index: 17, kind: output, shape index: {0}]   ;;  %s3677_s18 = inlined_call_operand.hbm [shape: f32[2,21], index: 18, kind: output, shape index: {1}]  }
   0x1   :  { %3681 = sst [smem:[#allocation15_spill]] %s3659_s0 }
   0x2   :  { %3682 = sst [smem:[#allocation16_spill]] %s3660_s1 }
   0x3   :  { %3683 = sst [smem:[#allocation17_spill]] %s3661_s2 }
   0x4   :  { %24 = vsyncpa [#allocation7], 0 }
   0x5   :  { %25 = vsyncpa [#allocation8], 0 }
   0x6   :  { %26 = vsyncpa [#allocation11], 0  ;;  %s3019_s27 = smov [#allocation6]   ;;  %s2947_s0 = scalar_lea.hbm %s3663_s4, 6144 }
   0x7   :  { %s40_s28 = sshll.u32 %s3019_s27, 4  ;;  %p2948_p0 = scmp.ne.s32.totalorder %s3663_s4, %s2947_s0  ;;  %s41_s28 = int_to_ptr.vmem [resolvable:$true] %s40_s28 }
   0x8   :  { %p2951_p1 = scmp.lt.u32.totalorder %s2947_s0, %s3663_s4 }
   0xa   :  { %p2953_p2 = pnand %p2951_p1, %p2948_p0 }
   0xc   :  { %2956 = shalt.err (!%p2953_p2)
}
   0xd   :  { %s2957_s22 = scalar_lea.vmem %s41_s28, 6144  ;;  %p2962_p4 = scmp.lt.s32.totalorder %s41_s28, %s41_s28 }
   0xe   :  { %p2958_p3 = scmp.ne.s32.totalorder %s41_s28, %s2957_s22  ;;  %p2963_p5 = scmp.lt.s32.totalorder %s2957_s22, %s2957_s22 }
  0x10   :  { %p2964_p6 = por %p2963_p5, %p2962_p4 }
  0x12   :  { %p2965_p7 = pnand %p2964_p6, %p2958_p3 }
  0x14   :  { %2968 = shalt.err (!%p2965_p7)
}
  0x15   :  { %s3020_s2 = smov 64   ;;  %s3021_s23 = smov 4  }
  0x16   :  { %46 = dma.hbm_to_vmem [thread:$0]  %s3663_s4, 6144, %s41_s28, [#allocation7], %s3020_s2, %s3020_s2, %s3021_s23  }
  0x17   :  { %3013 = dma.done.wait [#allocation7], 6144  }
  0x18   :  { %3014 = vsyncadd [#allocation7], 4294961152  ;;  %v3022_v0 = vmov 0.0   ;;  %vm3023_vm0 = vmmov 0   ;;  %s3684_s4 = sld [smem:[#allocation16_spill]]  ;;  %s3685_s30 = sld [smem:[#allocation15_spill]] }
  0x19   :  { %2668 = vmatprep.subr.bf16.mxu1 %v3022_v0  ;;  %75 = vst [vmem:[#allocation2] sm:$0x1] %v3022_v0  ;;  %76 = vst [vmem:[#allocation2 + $0x10] sm:$0x1] %v3022_v0  ;;  %2684 = vmatprep.mubr.msk.bf16.mxu1 %vm3023_vm0, %v3022_v0  ;;  %v2818_v28 = vld [vmem:[#allocation6 + $0x40] sm:$0xff]   ;;  %v2821_v31 = vld [vmem:[#allocation6 + $0x48] sm:$0xff]  }
  0x1a   :  { %77 = vst [vmem:[#allocation2 + $0x9] sm:$0x1] %v3022_v0  ;;  %78 = vst [vmem:[#allocation2 + $0x19] sm:$0x1] %v3022_v0  ;;  %v2820_v29 = vld [vmem:[#allocation6] sm:$0xff]   ;;  %v2823_v38 = vld [vmem:[#allocation6 + $0x8] sm:$0xff]  }
  0x1b   :  { %v2819_v30 = vld [vmem:[#allocation6 + $0x80] sm:$0xff]   ;;  %v2822_v39 = vld [vmem:[#allocation6 + $0x88] sm:$0xff]   ;;  %v2824_v40 = vld [vmem:[#allocation6 + $0x50] sm:$0xff]   ;;  %s3686_s25 = sld [smem:[#allocation17_spill]]  ;;  %vm1440_vm11 = vcmask 523264   ;;  %vm1444_vm12 = vcmask 253952  }
  0x1c   :  { %v2825_v41 = vld [vmem:[#allocation6 + $0x90] sm:$0xff]   ;;  %v2827_v43 = vld [vmem:[#allocation6 + $0x58] sm:$0xff]   ;;  %v2830_v46 = vld [vmem:[#allocation6 + $0x60] sm:$0xff]   ;;  %s3025_s29 = smov 96   ;;  %vm1470_vm13 = vcmask 516352   ;;  %vm1485_vm14 = vcmask 778752  }
  0x1d   :  { %v2826_v42 = vld [vmem:[#allocation6 + $0x10] sm:$0xff]   ;;  %v2828_v44 = vld [vmem:[#allocation6 + $0x98] sm:$0xff]   ;;  %v2831_v47 = vld [vmem:[#allocation6 + $0xa0] sm:$0xff]   ;;  %vm1503_vm15 = vcmask 1041152   ;;  %s3027_s28 = smov [#allocation10]  }
  0x1e   :  { %v2794_v1 = vld [vmem:[%s3684_s4 + $0x40] sm:$0xff]   ;;  %v2797_v4 = vld [vmem:[%s3684_s4 + $0x48] sm:$0xff]   ;;  %v2800_v7 = vld [vmem:[%s3684_s4 + $0x50] sm:$0xff]  }
  0x1f   :  { %v2795_v2 = vld [vmem:[%s3684_s4] sm:$0xff]   ;;  %2485 = vmatprep.subr.bf16.mxu0 %v2794_v1  ;;  %v2798_v5 = vld [vmem:[%s3684_s4 + $0x8] sm:$0xff]   ;;  %v2801_v8 = vld [vmem:[%s3684_s4 + $0x10] sm:$0xff]  }
  0x20   :  { %v2796_v3 = vld [vmem:[%s3684_s4 + $0x80] sm:$0xff]   ;;  %2486 = vmatpush3.bf16.msra.mxu0 %v2795_v2  ;;  %v2799_v6 = vld [vmem:[%s3684_s4 + $0x88] sm:$0xff]   ;;  %v2802_v9 = vld [vmem:[%s3684_s4 + $0x90] sm:$0xff]  }
  0x21   :  { %2669 = vmatpush3.bf16.msra.mxu1 %v2796_v3  ;;  %2487 = vmatprep.subr.bf16.mxu0 %v2797_v4  ;;  %v2803_v10 = vld [vmem:[%s3684_s4 + $0x58] sm:$0xff]   ;;  %v2806_v13 = vld [vmem:[%s3684_s4 + $0x60] sm:$0xff]   ;;  %v2809_v16 = vld [vmem:[%s3684_s4 + $0x68] sm:$0xff]  }
  0x22   :  { %2670 = vmatprep.subr.bf16.mxu1 %v3022_v0  ;;  %v2804_v11 = vld [vmem:[%s3684_s4 + $0x18] sm:$0xff]   ;;  %v2807_v14 = vld [vmem:[%s3684_s4 + $0x20] sm:$0xff]   ;;  %v2810_v17 = vld [vmem:[%s3684_s4 + $0x28] sm:$0xff]  }
  0x23   :  { %v2805_v12 = vld [vmem:[%s3684_s4 + $0x98] sm:$0xff]   ;;  %v2808_v15 = vld [vmem:[%s3684_s4 + $0xa0] sm:$0xff]   ;;  %v2811_v18 = vld [vmem:[%s3684_s4 + $0xa8] sm:$0xff]  }
  0x24   :  { %2488 = vmatpush3.bf16.msra.mxu0 %v2798_v5  ;;  %v2812_v19 = vld [vmem:[%s3684_s4 + $0x70] sm:$0xff]   ;;  %v2815_v22 = vld [vmem:[%s3684_s4 + $0x78] sm:$0xff]   ;;  %v3219_v23 = vld [vmem:[%s3685_s30] sm:$0xff] }
  0x25   :  { %2671 = vmatpush3.bf16.msra.mxu1 %v2799_v6  ;;  %2489 = vmatprep.subr.bf16.mxu0 %v2800_v7  ;;  %v2813_v20 = vld [vmem:[%s3684_s4 + $0x30] sm:$0xff]   ;;  %v3224_v24 = vld [vmem:[%s3685_s30 + $0x8] sm:$0xff]  ;;  %131 = vst [vmem:[#allocation2 + $0x1] sm:$0xff] %v3219_v23  ;;  %v2816_v26 = vld [vmem:[%s3684_s4 + $0x38] sm:$0xff]   ;;  %s2246_s30 = sshll.u32 %s3027_s28, 4  ;;  %s2247_s30 = int_to_ptr.vmem [resolvable:$true] %s2246_s30 }
  0x26   :  { %2672 = vmatprep.subr.bf16.mxu1 %v3022_v0  ;;  %v2814_v21 = vld [vmem:[%s3684_s4 + $0xb0] sm:$0xff]   ;;  %132 = vst [vmem:[#allocation2 + $0x11] sm:$0xff] %v3224_v24  ;;  %v140_v25 = vpack.c.bf16 %v3224_v24, %v3219_v23  ;;  %v2817_v27 = vld [vmem:[%s3684_s4 + $0xb8] sm:$0xff]   ;;  %v2833_v49 = vld [vmem:[#allocation6 + $0x68] sm:$0xff]   ;;  %p2974_p9 = scmp.lt.s32.totalorder %s2247_s30, %s2247_s30 }
  0x27   :  { %v2829_v45 = vld [vmem:[#allocation6 + $0x18] sm:$0xff]   ;;  %v2832_v48 = vld [vmem:[#allocation6 + $0x20] sm:$0xff]   ;;  %v2834_v50 = vld [vmem:[#allocation6 + $0xa8] sm:$0xff]  }
  0x28   :  { %2490 = vmatpush3.bf16.msra.mxu0 %v2801_v8  ;;  %318 = vmatprep.mubr.bf16.mxu0 %v140_v25  ;;  %v2835_v51 = vld [vmem:[#allocation6 + $0x28] sm:$0xff]   ;;  %v2836_v52 = vld [vmem:[#allocation6 + $0x70] sm:$0xff]   ;;  %v2839_v55 = vld [vmem:[#allocation6 + $0x78] sm:$0xff]  }
  0x29   :  { %2673 = vmatpush3.bf16.msra.mxu1 %v2802_v9  ;;  %2491 = vmatprep.subr.bf16.mxu0 %v2803_v10  ;;  %v2837_v53 = vld [vmem:[#allocation6 + $0xb0] sm:$0xff]   ;;  %v2840_v56 = vld [vmem:[#allocation6 + $0xb8] sm:$0xff]   ;;  %v2283_v1 = vld [vmem:[%s3686_s25] ss:$0 sm:$0xff] }
  0x2a   :  { %2674 = vmatprep.subr.bf16.mxu1 %v3022_v0  ;;  %v2838_v54 = vld [vmem:[#allocation6 + $0x30] sm:$0xff]   ;;  %v2841_v57 = vld [vmem:[#allocation6 + $0x38] sm:$0xff]   ;;  %v2284_v7 = vld [vmem:[%s3662_s3] ss:$0 sm:$0xff] }
  0x2b   :  { %v2843_v25 = vld [vmem:[%s3684_s4 + $0x140] sm:$0xff]  }
  0x2c   :  { %2492 = vmatpush3.bf16.msra.mxu0 %v2804_v11  ;;  %v133_v32 = vld [vmem:[#allocation2] sm:$0xff] }
  0x2d   :  { %2675 = vmatpush3.bf16.msra.mxu1 %v2805_v12  ;;  %2493 = vmatprep.subr.bf16.mxu0 %v2806_v13  ;;  %v134_v33 = vld [vmem:[#allocation2 + $0x10] sm:$0xff]  ;;  %v137_v34 = vld [vmem:[#allocation2 + $0x2] sm:$0xff] }
  0x2e   :  { %2676 = vmatprep.subr.bf16.mxu1 %v3022_v0  ;;  %v139_v35 = vpack.c.bf16 %v134_v33, %v133_v32  ;;  %v138_v36 = vld [vmem:[#allocation2 + $0x12] sm:$0xff] }
  0x2f   :  { %v141_v37 = vpack.c.bf16 %v138_v36, %v137_v34  ;;  %v2850_v32 = vld [vmem:[%s3684_s4 + $0xd0] sm:$0xff]   ;;  %v2851_v33 = vld [vmem:[%s3684_s4 + $0x118] sm:$0xff]   ;;  %v2854_v36 = vld [vmem:[%s3684_s4 + $0x120] sm:$0xff]  }
  0x30   :  { %2494 = vmatpush3.bf16.msra.mxu0 %v2807_v14  ;;  %v2852_v34 = vld [vmem:[%s3684_s4 + $0x158] sm:$0xff]  }
  0x31   :  { %2677 = vmatpush3.bf16.msra.mxu1 %v2808_v15  ;;  %2495 = vmatprep.subr.bf16.mxu0 %v2809_v16 }
  0x32   :  { %2678 = vmatprep.subr.bf16.mxu1 %v3022_v0 }
  0x34   :  { %2496 = vmatpush3.bf16.msra.mxu0 %v2810_v17 }
  0x35   :  { %2679 = vmatpush3.bf16.msra.mxu1 %v2811_v18  ;;  %2497 = vmatprep.subr.bf16.mxu0 %v2812_v19 }
  0x36   :  { %2680 = vmatprep.subr.bf16.mxu1 %v3022_v0 }
  0x38   :  { %2498 = vmatpush3.bf16.msra.mxu0 %v2813_v20 }
  0x39   :  { %2681 = vmatpush3.bf16.msra.mxu1 %v2814_v21  ;;  %2499 = vmatprep.subr.bf16.mxu0 %v2815_v22  ;;  %v2842_v22 = vld [vmem:[%s3684_s4 + $0x100] sm:$0xff]  }
  0x3a   :  { %2682 = vmatprep.subr.bf16.mxu1 %v3022_v0 }
  0x3c   :  { %2500 = vmatpush3.bf16.msra.mxu0 %v2816_v26  ;;  %v2844_v26 = vld [vmem:[%s3684_s4 + $0xc0] sm:$0xff]  }
  0x3d   :  { %2683 = vmatpush3.bf16.msra.mxu1 %v2817_v27  ;;  %2516 = vmatprep.subr.bf16.mxu0 %v2818_v28  ;;  %v2845_v27 = vld [vmem:[%s3684_s4 + $0x108] sm:$0xff]  }
  0x3e   :  { %2688 = vmatprep.subr.bf16.mxu1 %v3022_v0  ;;  %v2846_v28 = vld [vmem:[%s3684_s4 + $0x148] sm:$0xff]  }
  0x3f   :  { %319 = vmatmul.mubr.bf16.vlgmr.msra.gmra.mrb[0].mxu0 %v139_v35  ;;  %v2853_v35 = vld [vmem:[%s3684_s4 + $0xd8] sm:$0xff]  }
  0x40   :  { %2685 = vmatmul.mubr.bf16.vlgmr.msra.gmra.mrb[0].mxu1 %v141_v37  ;;  %2517 = vmatpush3.bf16.msra.mxu0 %v2820_v29  ;;  %v2847_v29 = vld [vmem:[%s3684_s4 + $0xc8] sm:$0xff]   ;;  %v2855_v37 = vld [vmem:[%s3684_s4 + $0x160] sm:$0xff]  }
  0x41   :  { %2689 = vmatpush3.bf16.msra.mxu1 %v2819_v30  ;;  %2518 = vmatprep.subr.bf16.mxu0 %v2821_v31  ;;  %v2848_v30 = vld [vmem:[%s3684_s4 + $0x110] sm:$0xff]  }
  0x42   :  { %2690 = vmatprep.subr.bf16.mxu1 %v3022_v0  ;;  %2704 = vmatprep.mubr.msk.bf16.mxu1 %vm3023_vm0, %v3022_v0  ;;  %v2849_v31 = vld [vmem:[%s3684_s4 + $0x150] sm:$0xff]  }
  0x44   :  { %2519 = vmatpush3.bf16.msra.mxu0 %v2823_v38  ;;  %v2856_v38 = vld [vmem:[%s3684_s4 + $0xe0] sm:$0xff]  }
  0x45   :  { %2691 = vmatpush3.bf16.msra.mxu1 %v2822_v39  ;;  %2520 = vmatprep.subr.bf16.mxu0 %v2824_v40  ;;  %v2857_v39 = vld [vmem:[%s3684_s4 + $0x128] sm:$0xff]  }
  0x46   :  { %2692 = vmatprep.subr.bf16.mxu1 %v3022_v0  ;;  %v2858_v40 = vld [vmem:[%s3684_s4 + $0x168] sm:$0xff]  }
  0x48   :  { %2521 = vmatpush3.bf16.msra.mxu0 %v2826_v42  ;;  %v2860_v42 = vld [vmem:[%s3684_s4 + $0x130] sm:$0xff]  }
  0x49   :  { %2693 = vmatpush3.bf16.msra.mxu1 %v2825_v41  ;;  %2522 = vmatprep.subr.bf16.mxu0 %v2827_v43  ;;  %v2859_v41 = vld [vmem:[%s3684_s4 + $0xe8] sm:$0xff]   ;;  %v2861_v43 = vld [vmem:[%s3684_s4 + $0x170] sm:$0xff]  }
  0x4a   :  { %2694 = vmatprep.subr.bf16.mxu1 %v3022_v0 }
  0x4c   :  { %2523 = vmatpush3.bf16.msra.mxu0 %v2829_v45  ;;  %v2863_v45 = vld [vmem:[%s3684_s4 + $0x138] sm:$0xff]  }
  0x4d   :  { %2695 = vmatpush3.bf16.msra.mxu1 %v2828_v44  ;;  %2524 = vmatprep.subr.bf16.mxu0 %v2830_v46  ;;  %v2862_v44 = vld [vmem:[%s3684_s4 + $0xf0] sm:$0xff]   ;;  %v2864_v46 = vld [vmem:[%s3684_s4 + $0x178] sm:$0xff]  }
  0x4e   :  { %2696 = vmatprep.subr.bf16.mxu1 %v3022_v0 }
  0x50   :  { %2525 = vmatpush3.bf16.msra.mxu0 %v2832_v48  ;;  %v2866_v48 = vld [vmem:[#allocation6 + $0x100] sm:$0xff]  }
  0x51   :  { %2697 = vmatpush3.bf16.msra.mxu1 %v2831_v47  ;;  %2526 = vmatprep.subr.bf16.mxu0 %v2833_v49  ;;  %v2865_v47 = vld [vmem:[%s3684_s4 + $0xf8] sm:$0xff]  }
  0x52   :  { %2698 = vmatprep.subr.bf16.mxu1 %v3022_v0 }
  0x54   :  { %2527 = vmatpush3.bf16.msra.mxu0 %v2835_v51 }
  0x55   :  { %2699 = vmatpush3.bf16.msra.mxu1 %v2834_v50  ;;  %2528 = vmatprep.subr.bf16.mxu0 %v2836_v52 }
  0x56   :  { %2700 = vmatprep.subr.bf16.mxu1 %v3022_v0 }
  0x58   :  { %2529 = vmatpush3.bf16.msra.mxu0 %v2838_v54 }
  0x59   :  { %2701 = vmatpush3.bf16.msra.mxu1 %v2837_v53  ;;  %2530 = vmatprep.subr.bf16.mxu0 %v2839_v55 }
  0x5a   :  { %2702 = vmatprep.subr.bf16.mxu1 %v3022_v0 }
  0x5c   :  { %2531 = vmatpush3.bf16.msra.mxu0 %v2841_v57 }
  0x5d   :  { %2703 = vmatpush3.bf16.msra.mxu1 %v2840_v56  ;;  %2547 = vmatprep.subr.bf16.mxu0 %v2842_v22  ;;  %v2309_v56 = vld [vmem:[%s3664_s5] ss:$0 sm:$0xff]  ;;  %v2872_v22 = vld [vmem:[#allocation6 + $0x110] sm:$0xff]  }
  0x5e   :  { %2708 = vmatprep.subr.bf16.mxu1 %v3022_v0 }
 0x112   :  { %v2501_v58 = vpop.f32.mrb[0].mxu0 }
 0x113   :  { %v361_v59 = vpop.f32.mrb[0].mxu1  ;;  %v2502_v60 = vpop.f32.mrb[1].mxu0 }
 0x114   :  { %v2503_v61 = vadd.f32 %v2502_v60, %v2501_v58  ;;  %v2686_v62 = vpop.f32.mrb[1].mxu1  ;;  %v2504_v63 = vpop.f32.mrb[2].mxu0 }
 0x115   :  { %v364_v2 = vpop.f32.mrb[2].mxu1  ;;  %v2505_v3 = vpop.f32.mrb[3].mxu0 }
 0x116   :  { %v362_v4 = vadd.f32 %v2503_v61, %v361_v59  ;;  %v2506_v5 = vadd.f32 %v2505_v3, %v2504_v63  ;;  %v2687_v6 = vpop.f32.mrb[3].mxu1  ;;  %v2310_v61 = vld [vmem:[%s3665_s6] ss:$0 sm:$0xff] }
 0x118   :  { %v374_v8 = vmul.f32 %v2283_v1, %v362_v4  ;;  %v365_v9 = vadd.f32 %v2506_v5, %v364_v2 }
 0x11a   :  { %v382_v10 = vadd.f32 %v2284_v7, %v374_v8  ;;  %v375_v11 = vmul.f32 %v2283_v1, %v365_v9 }
 0x11c   :  { %v384_v12 = vmax.f32 %v382_v10, 0.0  ;;  %v383_v13 = vadd.f32 %v2284_v7, %v375_v11 }
 0x11e   :  { %436 = vst [vmem:[#allocation2 + $0x1] sm:$0xff] %v384_v12  ;;  %v385_v14 = vmax.f32 %v383_v13, 0.0  ;;  %v2868_v13 = vld [vmem:[#allocation6 + $0xc0] sm:$0xff]  }
 0x120   :  { %437 = vst [vmem:[#allocation2 + $0x11] sm:$0xff] %v385_v14  ;;  %v445_v15 = vpack.c.bf16 %v385_v14, %v384_v12 }
 0x122   :  { %623 = vmatprep.mubr.bf16.mxu0 %v445_v15 }
 0x125   :  { %v442_v16 = vld [vmem:[#allocation2 + $0x2] sm:$0xff] }
 0x126   :  { %v438_v18 = vld [vmem:[#allocation2] sm:$0xff] }
 0x127   :  { %v443_v17 = vld [vmem:[#allocation2 + $0x12] sm:$0xff] }
 0x128   :  { %v439_v19 = vld [vmem:[#allocation2 + $0x10] sm:$0xff]  ;;  %v446_v20 = vpack.c.bf16 %v443_v17, %v442_v16 }
 0x129   :  { %v444_v21 = vpack.c.bf16 %v439_v19, %v438_v18  ;;  %v2869_v19 = vld [vmem:[#allocation6 + $0x108] sm:$0xff]  }
 0x12a   :  { %2705 = vmatmul.mubr.bf16.vlgmr.msra.gmra.mrb[4].mxu1 %v446_v20  ;;  %v2870_v20 = vld [vmem:[#allocation6 + $0x148] sm:$0xff]  }
 0x12b   :  { %624 = vmatmul.mubr.bf16.vlgmr.msra.gmra.mrb[4].mxu0 %v444_v21  ;;  %2724 = vmatprep.mubr.msk.bf16.mxu1 %vm3023_vm0, %v3022_v0  ;;  %v2871_v21 = vld [vmem:[#allocation6 + $0xc8] sm:$0xff]  }
 0x12c   :  { %2709 = vmatpush3.bf16.msra.mxu1 %v2843_v25  ;;  %2548 = vmatpush3.bf16.msra.mxu0 %v2844_v26  ;;  %v2873_v25 = vld [vmem:[#allocation6 + $0x150] sm:$0xff]  }
 0x12d   :  { %2710 = vmatprep.subr.bf16.mxu1 %v3022_v0  ;;  %2549 = vmatprep.subr.bf16.mxu0 %v2845_v27  ;;  %v2874_v26 = vld [vmem:[#allocation6 + $0xd0] sm:$0xff]   ;;  %v2875_v27 = vld [vmem:[#allocation6 + $0x118] sm:$0xff]  }
 0x130   :  { %2711 = vmatpush3.bf16.msra.mxu1 %v2846_v28  ;;  %2550 = vmatpush3.bf16.msra.mxu0 %v2847_v29  ;;  %v2876_v28 = vld [vmem:[#allocation6 + $0x158] sm:$0xff]  }
 0x131   :  { %2712 = vmatprep.subr.bf16.mxu1 %v3022_v0  ;;  %2551 = vmatprep.subr.bf16.mxu0 %v2848_v30  ;;  %v2877_v29 = vld [vmem:[#allocation6 + $0xd8] sm:$0xff]   ;;  %v2878_v30 = vld [vmem:[#allocation6 + $0x120] sm:$0xff]  }
 0x134   :  { %2713 = vmatpush3.bf16.msra.mxu1 %v2849_v31  ;;  %2552 = vmatpush3.bf16.msra.mxu0 %v2850_v32  ;;  %v2879_v31 = vld [vmem:[#allocation6 + $0x160] sm:$0xff]  }
 0x135   :  { %2714 = vmatprep.subr.bf16.mxu1 %v3022_v0  ;;  %2553 = vmatprep.subr.bf16.mxu0 %v2851_v33  ;;  %v2880_v32 = vld [vmem:[#allocation6 + $0xe0] sm:$0xff]   ;;  %v2881_v33 = vld [vmem:[#allocation6 + $0x128] sm:$0xff]  }
 0x138   :  { %2715 = vmatpush3.bf16.msra.mxu1 %v2852_v34  ;;  %2554 = vmatpush3.bf16.msra.mxu0 %v2853_v35  ;;  %v2882_v34 = vld [vmem:[#allocation6 + $0x168] sm:$0xff]  }
 0x139   :  { %2716 = vmatprep.subr.bf16.mxu1 %v3022_v0  ;;  %2555 = vmatprep.subr.bf16.mxu0 %v2854_v36  ;;  %v2883_v35 = vld [vmem:[#allocation6 + $0xe8] sm:$0xff]   ;;  %v2884_v36 = vld [vmem:[#allocation6 + $0x130] sm:$0xff]  }
 0x13c   :  { %2717 = vmatpush3.bf16.msra.mxu1 %v2855_v37  ;;  %2556 = vmatpush3.bf16.msra.mxu0 %v2856_v38  ;;  %v2885_v37 = vld [vmem:[#allocation6 + $0x170] sm:$0xff]  }
 0x13d   :  { %2718 = vmatprep.subr.bf16.mxu1 %v3022_v0  ;;  %2557 = vmatprep.subr.bf16.mxu0 %v2857_v39  ;;  %v2886_v38 = vld [vmem:[#allocation6 + $0xf0] sm:$0xff]   ;;  %v2887_v39 = vld [vmem:[#allocation6 + $0x138] sm:$0xff]  }
 0x140   :  { %2719 = vmatpush3.bf16.msra.mxu1 %v2858_v40  ;;  %2558 = vmatpush3.bf16.msra.mxu0 %v2859_v41  ;;  %v2888_v40 = vld [vmem:[#allocation6 + $0x178] sm:$0xff]  }
 0x141   :  { %2720 = vmatprep.subr.bf16.mxu1 %v3022_v0  ;;  %2559 = vmatprep.subr.bf16.mxu0 %v2860_v42  ;;  %v2889_v41 = vld [vmem:[#allocation6 + $0xf8] sm:$0xff]  }
 0x144   :  { %2721 = vmatpush3.bf16.msra.mxu1 %v2861_v43  ;;  %2560 = vmatpush3.bf16.msra.mxu0 %v2862_v44 }
 0x145   :  { %2722 = vmatprep.subr.bf16.mxu1 %v3022_v0  ;;  %2561 = vmatprep.subr.bf16.mxu0 %v2863_v45 }
 0x148   :  { %2723 = vmatpush3.bf16.msra.mxu1 %v2864_v46  ;;  %2562 = vmatpush3.bf16.msra.mxu0 %v2865_v47 }
 0x149   :  { %2728 = vmatprep.subr.bf16.mxu1 %v3022_v0  ;;  %2578 = vmatprep.subr.bf16.mxu0 %v2866_v48 }
 0x1fd   :  { %v666_v49 = vpop.f32.mrb[4].mxu1 }
 0x1fe   :  { %v2532_v50 = vpop.f32.mrb[4].mxu0  ;;  %v2706_v51 = vpop.f32.mrb[5].mxu1 }
 0x1ff   :  { %v2533_v52 = vpop.f32.mrb[5].mxu0  ;;  %v669_v54 = vpop.f32.mrb[6].mxu1 }
 0x200   :  { %v2534_v53 = vadd.f32 %v2533_v52, %v2532_v50  ;;  %v2535_v55 = vpop.f32.mrb[6].mxu0  ;;  %v2707_v57 = vpop.f32.mrb[7].mxu1 }
 0x201   :  { %v2536_v58 = vpop.f32.mrb[7].mxu0 }
 0x202   :  { %v667_v59 = vadd.f32 %v2534_v53, %v666_v49  ;;  %v2537_v60 = vadd.f32 %v2536_v58, %v2535_v55  ;;  %v2387_v49 = vld [vmem:[%s3686_s25 + $0x1] ss:$0 sm:$0xff]  ;;  %s2969_s25 = scalar_lea.vmem %s2247_s30, 32 }
 0x203   :  { %p2970_p8 = scmp.ne.s32.totalorder %s2247_s30, %s2969_s25  ;;  %p2975_p10 = scmp.lt.s32.totalorder %s2969_s25, %s2969_s25 }
 0x204   :  { %v679_v62 = vmul.f32 %v2309_v56, %v667_v59  ;;  %v670_v63 = vadd.f32 %v2537_v60, %v669_v54  ;;  %v2388_v54 = vld [vmem:[%s3662_s3 + $0x1] ss:$0 sm:$0xff] }
 0x205   :  { %p2976_p11 = por %p2975_p10, %p2974_p9 }
 0x206   :  { %v687_v1 = vadd.f32 %v2310_v61, %v679_v62  ;;  %v680_v2 = vmul.f32 %v2309_v56, %v670_v63 }
 0x207   :  { %p2977_p12 = pnand %p2976_p11, %p2970_p8 }
 0x208   :  { %v689_v3 = vadd.f32 %v687_v1, %v3219_v23  ;;  %v688_v4 = vadd.f32 %v2310_v61, %v680_v2  ;;  %v2890_v1 = vld [vmem:[%s3666_s7] sm:$0xff]  }
 0x20a   :  { %v691_v5 = vmax.f32 %v689_v3, 0.0  ;;  %v690_v6 = vadd.f32 %v688_v4, %v3224_v24  ;;  %v2867_v24 = vld [vmem:[#allocation6 + $0x140] sm:$0xff]  }
 0x20c   :  { %v2311_v7 = vclamps-f32 %v691_v5, 100.0  ;;  %v692_v8 = vmax.f32 %v690_v6, 0.0 }
 0x20e   :  { %vm697_vm1 = vcmp.ne.f32.partialorder %v2311_v7, %v2311_v7  ;;  %v2312_v9 = vclamps-f32 %v692_v8, 100.0  ;;  %v2892_v8 = vld [vmem:[%s3666_s7 + $0x10] sm:$0xff]  }
 0x20f   :  { %v3345_v10 = vsel %vm697_vm1, 0.0, %v2311_v7  ;;  %vm2943_vm4 = vmneg %vm697_vm1 }
 0x210   :  { %754 = vst [vmem:[#allocation2 + $0x1] sm:$0xff] %v3345_v10  ;;  %vm698_vm2 = vcmp.ne.f32.partialorder %v2312_v9, %v2312_v9  ;;  %v2945_v23 = vpack.c.bf16 %v2312_v9, %v2311_v7  ;;  %v2891_v7 = vld [vmem:[%s3666_s7 + $0x8] sm:$0xff]  }
 0x211   :  { %v3348_v11 = vsel %vm698_vm2, 0.0, %v2312_v9  ;;  %vm2942_vm3 = vmneg %vm698_vm2  ;;  %v2893_v9 = vld [vmem:[%s3666_s7 + $0x18] sm:$0xff]   ;;  %vm1917_vm2 = vcmask 261120  }
 0x212   :  { %755 = vst [vmem:[#allocation2 + $0x11] sm:$0xff] %v3348_v11  ;;  %vm2944_vm5 = vmpackc.low %vm2942_vm3, %vm2943_vm4  ;;  %vm2228_vm3 = vcmask 164864  }
 0x213   :  { %2946 = vmatprep.mubr.msk.bf16.mxu0 %vm2944_vm5, %v2945_v23  ;;  %v2894_v23 = vld [vmem:[%s3666_s7 + $0x20] sm:$0xff]  }
 0x217   :  { %v760_v12 = vld [vmem:[#allocation2 + $0x2] sm:$0xff] }
 0x218   :  { %v756_v15 = vld [vmem:[#allocation2] sm:$0xff] }
 0x219   :  { %v761_v14 = vld [vmem:[#allocation2 + $0x12] sm:$0xff] }
 0x21a   :  { %v757_v16 = vld [vmem:[#allocation2 + $0x10] sm:$0xff]  ;;  %v764_v17 = vpack.c.bf16 %v761_v14, %v760_v12  ;;  %v2895_v12 = vld [vmem:[%s3666_s7 + $0x28] sm:$0xff]  }
 0x21b   :  { %v762_v18 = vpack.c.bf16 %v757_v16, %v756_v15 }
 0x21c   :  { %2725 = vmatmul.mubr.bf16.vlgmr.msra.gmra.mrb[8].mxu1 %v764_v17 }
 0x21d   :  { %942 = vmatmul.mubr.bf16.vlgmr.msra.gmra.mrb[8].mxu0 %v762_v18  ;;  %2729 = vmatpush3.bf16.msra.mxu1 %v2867_v24  ;;  %v2896_v24 = vld [vmem:[%s3666_s7 + $0x30] sm:$0xff]  }
 0x21e   :  { %2579 = vmatpush3.bf16.msra.mxu0 %v2868_v13  ;;  %2730 = vmatprep.subr.bf16.mxu1 %v3022_v0  ;;  %v2897_v13 = vld [vmem:[%s3666_s7 + $0x38] sm:$0xff]  }
 0x21f   :  { %2580 = vmatprep.subr.bf16.mxu0 %v2869_v19  ;;  %2744 = vmatprep.mubr.msk.bf16.mxu1 %vm3023_vm0, %v3022_v0 }
 0x221   :  { %2731 = vmatpush3.bf16.msra.mxu1 %v2870_v20 }
 0x222   :  { %2581 = vmatpush3.bf16.msra.mxu0 %v2871_v21  ;;  %2732 = vmatprep.subr.bf16.mxu1 %v3022_v0  ;;  %v2415_v21 = vld [vmem:[%s3664_s5 + $0x1] ss:$0 sm:$0xff] }
 0x223   :  { %2582 = vmatprep.subr.bf16.mxu0 %v2872_v22 }
 0x225   :  { %2733 = vmatpush3.bf16.msra.mxu1 %v2873_v25 }
 0x226   :  { %2583 = vmatpush3.bf16.msra.mxu0 %v2874_v26  ;;  %2734 = vmatprep.subr.bf16.mxu1 %v3022_v0 }
 0x227   :  { %2584 = vmatprep.subr.bf16.mxu0 %v2875_v27 }
 0x229   :  { %2735 = vmatpush3.bf16.msra.mxu1 %v2876_v28  ;;  %v2416_v28 = vld [vmem:[%s3665_s6 + $0x1] ss:$0 sm:$0xff]  ;;  %s3026_s6 = smov 32  }
 0x22a   :  { %2585 = vmatpush3.bf16.msra.mxu0 %v2877_v29  ;;  %2736 = vmatprep.subr.bf16.mxu1 %v3022_v0 }
 0x22b   :  { %2586 = vmatprep.subr.bf16.mxu0 %v2878_v30 }
 0x22d   :  { %2737 = vmatpush3.bf16.msra.mxu1 %v2879_v31 }
 0x22e   :  { %2587 = vmatpush3.bf16.msra.mxu0 %v2880_v32  ;;  %2738 = vmatprep.subr.bf16.mxu1 %v3022_v0 }
 0x22f   :  { %2588 = vmatprep.subr.bf16.mxu0 %v2881_v33 }
 0x231   :  { %2739 = vmatpush3.bf16.msra.mxu1 %v2882_v34 }
 0x232   :  { %2589 = vmatpush3.bf16.msra.mxu0 %v2883_v35  ;;  %2740 = vmatprep.subr.bf16.mxu1 %v3022_v0 }
 0x233   :  { %2590 = vmatprep.subr.bf16.mxu0 %v2884_v36 }
 0x235   :  { %2741 = vmatpush3.bf16.msra.mxu1 %v2885_v37 }
 0x236   :  { %2591 = vmatpush3.bf16.msra.mxu0 %v2886_v38  ;;  %2742 = vmatprep.subr.bf16.mxu1 %v3022_v0 }
 0x237   :  { %2592 = vmatprep.subr.bf16.mxu0 %v2887_v39 }
 0x239   :  { %2743 = vmatpush3.bf16.msra.mxu1 %v2888_v40 }
 0x23a   :  { %2593 = vmatpush3.bf16.msra.mxu0 %v2889_v41  ;;  %v2899_v41 = vld [vmem:[%s3668_s9] sm:$0xff]  }
 0x23b   :  { %2748 = vmatprep.subr.bf16.mxu0 %v3022_v0 }
 0x2ef   :  { %v984_v42 = vpop.f32.mrb[8].mxu1 }
 0x2f0   :  { %v2563_v43 = vpop.f32.mrb[8].mxu0  ;;  %v2726_v44 = vpop.f32.mrb[9].mxu1 }
 0x2f1   :  { %v2564_v45 = vpop.f32.mrb[9].mxu0  ;;  %v987_v47 = vpop.f32.mrb[10].mxu1 }
 0x2f2   :  { %v2565_v46 = vadd.f32 %v2564_v45, %v2563_v43  ;;  %v2566_v48 = vpop.f32.mrb[10].mxu0  ;;  %v2727_v50 = vpop.f32.mrb[11].mxu1 }
 0x2f3   :  { %v2567_v51 = vpop.f32.mrb[11].mxu0  ;;  %v3024_v50 = vmov 1983009808  }
 0x2f4   :  { %v985_v52 = vadd.f32 %v2565_v46, %v984_v42  ;;  %v2568_v53 = vadd.f32 %v2567_v51, %v2566_v48  ;;  %v2900_v46 = vld [vmem:[%s3668_s9 + $0x48] sm:$0xff]   ;;  %v1448_v51 = vunpack.c.l.s4 %v3024_v50  ;;  %v2915_v50 = vld [vmem:[%s3672_s13] sm:$0xff]  }
 0x2f6   :  { %v997_v55 = vmul.f32 %v2387_v49, %v985_v52  ;;  %v988_v56 = vadd.f32 %v2568_v53, %v987_v47  ;;  %v2901_v47 = vld [vmem:[%s3668_s9 + $0x8] sm:$0xff]   ;;  %v1450_v52 = vlaneseq  ;;  %v2902_v53 = vld [vmem:[%s3668_s9 + $0x50] sm:$0xff]  }
 0x2f8   :  { %v1005_v57 = vadd.f32 %v2388_v54, %v997_v55  ;;  %v998_v58 = vmul.f32 %v2387_v49, %v988_v56  ;;  %v1449_v56 = vunpack.c.0.s8 %v1448_v51 }
 0x2fa   :  { %v1007_v59 = vmax.f32 %v1005_v57, 0.0  ;;  %v1006_v60 = vadd.f32 %v2388_v54, %v998_v58  ;;  %v2903_v54 = vld [vmem:[%s3668_s9 + $0x10] sm:$0xff]   ;;  %v1451_v57 = vshrl.u32 %v1450_v52, 7 }
 0x2fc   :  { %1062 = vst [vmem:[#allocation2 + $0x1] sm:$0xff] %v1007_v59  ;;  %v1008_v61 = vmax.f32 %v1006_v60, 0.0 }
 0x2fe   :  { %1063 = vst [vmem:[#allocation2 + $0x11] sm:$0xff] %v1008_v61  ;;  %v1071_v62 = vpack.c.bf16 %v1008_v61, %v1007_v59  ;;  %v3444_v61 = vsub.s32 %v1449_v56, %v1451_v57  ;;  %v2918_v57 = vld [vmem:[%s3672_s13 + $0x50] sm:$0xff]  }
 0x300   :  { %1249 = vmatprep.mubr.bf16.mxu0 %v1071_v62 }
 0x303   :  { %v1068_v63 = vld [vmem:[#allocation2 + $0x2] sm:$0xff] }
 0x304   :  { %v1064_v3 = vld [vmem:[#allocation2] sm:$0xff] }
 0x305   :  { %v1069_v2 = vld [vmem:[#allocation2 + $0x12] sm:$0xff] }
 0x306   :  { %v1065_v4 = vld [vmem:[#allocation2 + $0x10] sm:$0xff]  ;;  %v1072_v5 = vpack.c.bf16 %v1069_v2, %v1068_v63 }
 0x307   :  { %v1070_v6 = vpack.c.bf16 %v1065_v4, %v1064_v3 }
 0x308   :  { %2745 = vmatmul.mubr.bf16.vlgmr.msra.gmra.mrb[12].mxu1 %v1072_v5 }
 0x309   :  { %1250 = vmatmul.mubr.bf16.vlgmr.msra.gmra.mrb[12].mxu0 %v1070_v6 }
 0x30a   :  { %2749 = vmatpush3.bf16.msra.mxu0 %v2890_v1  ;;  %2764 = vmatprep.mubr.msk.bf16.mxu0 %vm3023_vm0, %v3022_v0 }
 0x30b   :  { %2750 = vmatprep.subr.bf16.mxu0 %v3022_v0 }
 0x30e   :  { %2751 = vmatpush3.bf16.msra.mxu0 %v2891_v7  ;;  %v2904_v7 = vld [vmem:[%s3668_s9 + $0x58] sm:$0xff]  }
 0x30f   :  { %2752 = vmatprep.subr.bf16.mxu0 %v3022_v0 }
 0x312   :  { %2753 = vmatpush3.bf16.msra.mxu0 %v2892_v8  ;;  %v2905_v8 = vld [vmem:[%s3668_s9 + $0x18] sm:$0xff]  }
 0x313   :  { %2754 = vmatprep.subr.bf16.mxu0 %v3022_v0 }
 0x316   :  { %2755 = vmatpush3.bf16.msra.mxu0 %v2893_v9  ;;  %v2906_v9 = vld [vmem:[%s3668_s9 + $0x60] sm:$0xff]  }
 0x317   :  { %2756 = vmatprep.subr.bf16.mxu0 %v3022_v0 }
 0x31a   :  { %2757 = vmatpush3.bf16.msra.mxu0 %v2894_v23 }
 0x31b   :  { %2758 = vmatprep.subr.bf16.mxu0 %v3022_v0 }
 0x31e   :  { %2759 = vmatpush3.bf16.msra.mxu0 %v2895_v12 }
 0x31f   :  { %2760 = vmatprep.subr.bf16.mxu0 %v3022_v0 }
 0x322   :  { %2761 = vmatpush3.bf16.msra.mxu0 %v2896_v24  ;;  %v2907_v24 = vld [vmem:[%s3668_s9 + $0x20] sm:$0xff]  }
 0x323   :  { %2762 = vmatprep.subr.bf16.mxu0 %v3022_v0 }
 0x326   :  { %2763 = vmatpush3.bf16.msra.mxu0 %v2897_v13 }
 0x327   :  { %2768 = vmatprep.subr.bf16.mxu0 %v3022_v0 }
 0x3db   :  { %v1292_v14 = vpop.f32.mrb[12].mxu1 }
 0x3dc   :  { %v2594_v15 = vpop.f32.mrb[12].mxu0  ;;  %v2746_v16 = vpop.f32.mrb[13].mxu1 }
 0x3dd   :  { %v2595_v17 = vpop.f32.mrb[13].mxu0  ;;  %v1295_v19 = vpop.f32.mrb[14].mxu1 }
 0x3de   :  { %v2596_v18 = vadd.f32 %v2595_v17, %v2594_v15  ;;  %v2597_v20 = vpop.f32.mrb[14].mxu0  ;;  %v2747_v22 = vpop.f32.mrb[15].mxu1  ;;  %v2908_v15 = vld [vmem:[%s3668_s9 + $0x68] sm:$0xff]  }
 0x3df   :  { %v2598_v25 = vpop.f32.mrb[15].mxu0  ;;  %v2909_v17 = vld [vmem:[%s3668_s9 + $0x28] sm:$0xff]   ;;  %v2912_v22 = vld [vmem:[%s3668_s9 + $0x78] sm:$0xff]  }
 0x3e0   :  { %v1293_v26 = vadd.f32 %v2596_v18, %v1292_v14  ;;  %v2599_v27 = vadd.f32 %v2598_v25, %v2597_v20  ;;  %v2910_v18 = vld [vmem:[%s3668_s9 + $0x70] sm:$0xff]  }
 0x3e1   :  { %v2911_v20 = vld [vmem:[%s3668_s9 + $0x30] sm:$0xff]  }
 0x3e2   :  { %v1305_v29 = vmul.f32 %v2415_v21, %v1293_v26  ;;  %v1296_v30 = vadd.f32 %v2599_v27, %v1295_v19  ;;  %v2913_v27 = vld [vmem:[%s3668_s9 + $0x38] sm:$0xff]  }
 0x3e4   :  { %v1313_v31 = vadd.f32 %v2416_v28, %v1305_v29  ;;  %v1306_v32 = vmul.f32 %v2415_v21, %v1296_v30  ;;  %v2914_v29 = vld [vmem:[%s3672_s13 + $0x40] sm:$0xff]  }
 0x3e6   :  { %v1315_v33 = vadd.f32 %v1313_v31, %v3345_v10  ;;  %v1314_v34 = vadd.f32 %v2416_v28, %v1306_v32  ;;  %v2419_v10 = vld [vmem:[%s3667_s8] ss:$0 sm:$0xff] }
 0x3e8   :  { %v1317_v35 = vmax.f32 %v1315_v33, 0.0  ;;  %v1316_v36 = vadd.f32 %v1314_v34, %v3348_v11  ;;  %v2898_v11 = vld [vmem:[%s3668_s9 + $0x40] sm:$0xff]  }
 0x3e9   :  { %2618 = vmatprep.subr.bf16.mxu1 %v2898_v11 }
 0x3ea   :  { %v1318_v37 = vmax.f32 %v1316_v36, 0.0  ;;  %v2417_v38 = vclamps-f32 %v1317_v35, 100.0  ;;  %2619 = vmatpush3.bf16.msra.mxu1 %v2899_v41 }
 0x3eb   :  { %2620 = vmatprep.subr.bf16.mxu1 %v2900_v46 }
 0x3ec   :  { %v2418_v39 = vclamps-f32 %v1318_v37, 100.0  ;;  %vm1323_vm6 = vcmp.ne.f32.partialorder %v2417_v38, %v2417_v38 }
 0x3ed   :  { %vm2429_vm8 = vmneg %vm1323_vm6 }
 0x3ee   :  { %vm1324_vm7 = vcmp.ne.f32.partialorder %v2418_v39, %v2418_v39  ;;  %v2431_v40 = vpack.c.bf16 %v2418_v39, %v2417_v38  ;;  %2621 = vmatpush3.bf16.msra.mxu1 %v2901_v47 }
 0x3ef   :  { %vm2428_vm9 = vmneg %vm1324_vm7  ;;  %2622 = vmatprep.subr.bf16.mxu1 %v2902_v53  ;;  %v2916_v53 = vld [vmem:[%s3672_s13 + $0x48] sm:$0xff]  }
 0x3f0   :  { %vm2430_vm10 = vmpackc.low %vm2428_vm9, %vm2429_vm8 }
 0x3f1   :  { %2765 = vmatmul.mubr.msk.bf16.vlgmr.msra.gmra.mrb[16].mxu0 %vm2430_vm10, %v2431_v40 }
 0x3f2   :  { %2772 = vmatprep.mubr.msk.bf16.mxu0 %vm3023_vm0, %v3022_v0  ;;  %2623 = vmatpush3.bf16.msra.mxu1 %v2903_v54 }
 0x3f3   :  { %2624 = vmatprep.subr.bf16.mxu1 %v2904_v7 }
 0x3f6   :  { %2625 = vmatpush3.bf16.msra.mxu1 %v2905_v8 }
 0x3f7   :  { %2626 = vmatprep.subr.bf16.mxu1 %v2906_v9 }
 0x3fa   :  { %2627 = vmatpush3.bf16.msra.mxu1 %v2907_v24  ;;  %v2929_v24 = vld [vmem:[%s3672_s13 + $0x38] sm:$0xff]  }
 0x3fb   :  { %2628 = vmatprep.subr.bf16.mxu1 %v2908_v15  ;;  %v2931_v15 = vld [vmem:[%s3670_s11 + $0x8] sm:$0xff]  }
 0x3fe   :  { %2629 = vmatpush3.bf16.msra.mxu1 %v2909_v17  ;;  %v2442_v17 = vld [vmem:[%s3669_s10] ss:$0 sm:$0xff] }
 0x3ff   :  { %2630 = vmatprep.subr.bf16.mxu1 %v2910_v18 }
 0x402   :  { %2631 = vmatpush3.bf16.msra.mxu1 %v2911_v20 }
 0x403   :  { %2632 = vmatprep.subr.bf16.mxu1 %v2912_v22 }
 0x406   :  { %2633 = vmatpush3.bf16.msra.mxu1 %v2913_v27 }
 0x407   :  { %2643 = vmatprep.subr.bf16.mxu1 %v2914_v29 }
 0x4c4   :  { %v1433_v42 = vpop.f32.mrb[16].mxu0 }
 0x4c5   :  { %v1434_v43 = vadd.f32 %v2419_v10, %v1433_v42  ;;  %v2766_v44 = vpop.f32.mrb[17].mxu0 }
 0x4c6   :  { %v1436_v45 = vpop.f32.mrb[18].mxu0 }
 0x4c7   :  { %1441 = vst.msk [vmem:[#allocation3] sm:$0xff] %vm1440_vm11, %v1434_v43  ;;  %v1437_v48 = vadd.f32 %v2419_v10, %v1436_v45  ;;  %v2767_v49 = vpop.f32.mrb[19].mxu0 }
 0x4c9   :  { %1442 = vst.msk [vmem:[#allocation3 + $0x8] sm:$0xff] %vm1440_vm11, %v1437_v48 }
 0x4ce   :  { %v3432_v55 = vld.sshfl [vmem:[#allocation3 + $0x6] sm:$0x1 pattern:$0x76325410]  ;;  %v3440_v59 = vld [vmem:[#allocation3 + $0x1] sm:$0x1] }
 0x4cf   :  { %1546 = vrot.lane.b32.xlu1 %v3432_v55, %s3020_s2  ;;  %v3436_v58 = vld.sshfl [vmem:[#allocation3 + $0x2] sm:$0x1 pattern:$0x76325410]  ;;  %v1443_v62 = vld [vmem:[#allocation3] sm:$0x1]  ;;  %v1466_v6 = vrot.slane %v3440_v59, %v3444_v61 }
 0x4d0   :  { %1482 = vrot.lane.b32.xlu0 %v3436_v58, %s3020_s2  ;;  %v3442_v60 = vld.sshfl [vmem:[#allocation3 + $0x7] sm:$0x1 pattern:$0x76325410]  ;;  %1445 = vst.msk [vmem:[#allocation4] sm:$0x1] %vm1444_vm12, %v1443_v62  ;;  %v1453_v28 = vrot.slane %v1443_v62, %v3444_v61 }
 0x4d1   :  { %v2434_v63 = vld.sshfl [vmem:[#allocation3 + $0x3] sm:$0x1 pattern:$0x76325410]  ;;  %v1509_v1 = vld [vmem:[#allocation3 + $0x4] sm:$0x1] }
 0x4d2   :  { %v3450_v2 = vld [vmem:[#allocation3 + $0x9] sm:$0x1]  ;;  %1510 = vst.msk [vmem:[#allocation4 + $0x2] sm:$0x1] %vm1444_vm12, %v1509_v1  ;;  %v1633_v3 = vld [vmem:[#allocation3 + $0xc] sm:$0x1]  ;;  %v1518_v26 = vrot.slane %v1509_v1, %v3444_v61 }
 0x4d3   :  { %1563 = vrot.lane.b32.xlu1 %v3442_v60, %s3025_s29  ;;  %v2439_v4 = vld.sshfl [vmem:[#allocation3 + $0xe] sm:$0x1 pattern:$0x76325410]  ;;  %1634 = vst.msk [vmem:[#allocation4 + $0x3] sm:$0x1] %vm1444_vm12, %v1633_v3  ;;  %v1593_v12 = vrot.slane %v3450_v2, %v3444_v61  ;;  %v1642_v30 = vrot.slane %v1633_v3, %v3444_v61 }
 0x4d4   :  { %1500 = vrot.lane.b32.xlu0 %v2434_v63, %s3025_s29  ;;  %v1571_v5 = vld [vmem:[#allocation3 + $0x8] sm:$0x1]  ;;  %v3467_v23 = vld [vmem:[#allocation3 + $0x5] sm:$0x1]  ;;  %v3477_v14 = vld [vmem:[#allocation3 + $0xd] sm:$0x1] }
 0x4d5   :  { %1572 = vst.msk [vmem:[#allocation4 + $0x1] sm:$0x1] %vm1444_vm12, %v1571_v5  ;;  %v1531_v13 = vrot.slane %v3467_v23, %v3444_v61  ;;  %v1655_v16 = vrot.slane %v3477_v14, %v3444_v61  ;;  %v2437_v19 = vld.sshfl [vmem:[#allocation3 + $0xa] sm:$0x1 pattern:$0x76325410]  ;;  %v1580_v31 = vrot.slane %v1571_v5, %v3444_v61 }
 0x4d6   :  { %v2440_v21 = vld.sshfl [vmem:[#allocation3 + $0xf] sm:$0x1 pattern:$0x76325410]  ;;  %v2920_v61 = vld [vmem:[%s3672_s13 + $0x58] sm:$0xff]   ;;  %v2922_v3 = vld [vmem:[%s3672_s13 + $0x60] sm:$0xff]  }
 0x4d7   :  { %1670 = vrot.lane.b32.xlu1 %v2439_v4, %s3020_s2  ;;  %v2438_v25 = vld.sshfl [vmem:[#allocation3 + $0xb] sm:$0x1 pattern:$0x76325410] }
 0x4d8   :  { %1467 = vrot.lane.b32.xlu0 %v1466_v6, %s3026_s6  ;;  %v2925_v5 = vld [vmem:[%s3672_s13 + $0x28] sm:$0xff]   ;;  %v2926_v6 = vld [vmem:[%s3672_s13 + $0x70] sm:$0xff]  }
 0x4db   :  { %1594 = vrot.lane.b32.xlu1 %v1593_v12, %s3026_s6  ;;  %v2928_v12 = vld [vmem:[%s3672_s13 + $0x78] sm:$0xff]  }
 0x4dc   :  { %1532 = vrot.lane.b32.xlu0 %v1531_v13, %s3026_s6 }
 0x4df   :  { %1656 = vrot.lane.b32.xlu1 %v1655_v16, %s3026_s6 }
 0x4e0   :  { %1608 = vrot.lane.b32.xlu0 %v2437_v19, %s3020_s2 }
 0x4e3   :  { %1687 = vrot.lane.b32.xlu1 %v2440_v21, %s3025_s29 }
 0x4e4   :  { %1625 = vrot.lane.b32.xlu0 %v2438_v25, %s3025_s29 }
 0x4e7   :  { %1519 = vrot.lane.b32.xlu1 %v1518_v26, %s3025_s29 }
 0x4e8   :  { %1454 = vrot.lane.b32.xlu0 %v1453_v28, %s3025_s29 }
 0x4eb   :  { %1550 = vrot.lane.b32.xlu1 %v3432_v55, %s3026_s6  ;;  %v2917_v55 = vld [vmem:[%s3672_s13 + $0x8] sm:$0xff]  }
 0x4ec   :  { %1487 = vrot.lane.b32.xlu0 %v3436_v58, %s3026_s6 }
 0x4ef   :  { %1674 = vrot.lane.b32.xlu1 %v2439_v4, %s3026_s6  ;;  %v2924_v4 = vld [vmem:[%s3672_s13 + $0x68] sm:$0xff]  }
 0x4f0   :  { %1612 = vrot.lane.b32.xlu0 %v2437_v19, %s3026_s6 }
 0x4f3   :  { %1567 = vrot.lane.b32.xlu1 %v3442_v60, %s3020_s2 }
 0x4f4   :  { %1505 = vrot.lane.b32.xlu0 %v2434_v63, %s3020_s2  ;;  %v2921_v63 = vld [vmem:[%s3672_s13 + $0x18] sm:$0xff]  }
 0x4f7   :  { %1643 = vrot.lane.b32.xlu1 %v1642_v30, %s3025_s29 }
 0x4f8   :  { %1581 = vrot.lane.b32.xlu0 %v1580_v31, %s3025_s29 }
 0x4fb   :  { %1691 = vrot.lane.b32.xlu1 %v2440_v21, %s3020_s2 }
 0x4fc   :  { %1629 = vrot.lane.b32.xlu0 %v2438_v25, %s3020_s2 }
 0x541   :  { %v1547_v32 = vpop.permute.xlu1 %1546 }
 0x542   :  { %v1483_v33 = vpop.permute.xlu0 %1482 }
 0x545   :  { %v1564_v34 = vpop.permute.xlu1 %1563 }
 0x546   :  { %v1501_v35 = vpop.permute.xlu0 %1500 }
 0x549   :  { %v1671_v36 = vpop.permute.xlu1 %1670 }
 0x54a   :  { %v1468_v37 = vpop.permute.xlu0 %1467 }
 0x54b   :  { %1471 = vst.msk [vmem:[#allocation4] sm:$0x1] %vm1470_vm13, %v1468_v37  ;;  %v2464_v37 = vld [vmem:[%s3673_s14] ss:$0 sm:$0xff] }
 0x54c   :  { %1486 = vst.msk [vmem:[#allocation4] sm:$0x1] %vm1485_vm14, %v1483_v33  ;;  %v2932_v33 = vld [vmem:[%s3674_s15] sm:$0xff]  }
 0x54d   :  { %1504 = vst.msk [vmem:[#allocation4] sm:$0x1] %vm1503_vm15, %v1501_v35  ;;  %v1595_v38 = vpop.permute.xlu1 %1594  ;;  %v2933_v35 = vld [vmem:[%s3674_s15 + $0x8] sm:$0xff]  }
 0x54e   :  { %v1533_v39 = vpop.permute.xlu0 %1532  ;;  %1597 = vst.msk [vmem:[#allocation4 + $0x1] sm:$0x1] %vm1470_vm13, %v1595_v38 }
 0x54f   :  { %1535 = vst.msk [vmem:[#allocation4 + $0x2] sm:$0x1] %vm1470_vm13, %v1533_v39 }
 0x550   :  { %1549 = vst.msk [vmem:[#allocation4 + $0x2] sm:$0x1] %vm1485_vm14, %v1547_v32 }
 0x551   :  { %1566 = vst.msk [vmem:[#allocation4 + $0x2] sm:$0x1] %vm1503_vm15, %v1564_v34  ;;  %v1657_v40 = vpop.permute.xlu1 %1656 }
 0x552   :  { %v1609_v10 = vpop.permute.xlu0 %1608  ;;  %1659 = vst.msk [vmem:[#allocation4 + $0x3] sm:$0x1] %vm1470_vm13, %v1657_v40 }
 0x553   :  { %1611 = vst.msk [vmem:[#allocation4 + $0x1] sm:$0x1] %vm1485_vm14, %v1609_v10  ;;  %1673 = vst.msk [vmem:[#allocation4 + $0x3] sm:$0x1] %vm1485_vm14, %v1671_v36 }
 0x555   :  { %v1688_v11 = vpop.permute.xlu1 %1687 }
 0x556   :  { %v1626_v41 = vpop.permute.xlu0 %1625  ;;  %1690 = vst.msk [vmem:[#allocation4 + $0x3] sm:$0x1] %vm1503_vm15, %v1688_v11 }
 0x557   :  { %1628 = vst.msk [vmem:[#allocation4 + $0x1] sm:$0x1] %vm1503_vm15, %v1626_v41 }
 0x559   :  { %v1520_v42 = vpop.permute.xlu1 %1519 }
 0x55a   :  { %v1455_v43 = vpop.permute.xlu0 %1454  ;;  %1522 = vst.msk [vmem:[#allocation5 + $0x2] sm:$0x1] %vm1444_vm12, %v1520_v42 }
 0x55b   :  { %1457 = vst.msk [vmem:[#allocation5] sm:$0x1] %vm1444_vm12, %v1455_v43 }
 0x55c   :  { %1536 = vst.msk [vmem:[#allocation5 + $0x2] sm:$0x1] %vm1470_vm13, %v3467_v23  ;;  %1472 = vst.msk [vmem:[#allocation5] sm:$0x1] %vm1470_vm13, %v3440_v59  ;;  %v2919_v59 = vld [vmem:[%s3672_s13 + $0x10] sm:$0xff]  }
 0x55d   :  { %v1551_v44 = vpop.permute.xlu1 %1550  ;;  %v2927_v23 = vld [vmem:[%s3672_s13 + $0x30] sm:$0xff]  }
 0x55e   :  { %v1488_v45 = vpop.permute.xlu0 %1487  ;;  %1553 = vst.msk [vmem:[#allocation5 + $0x2] sm:$0x1] %vm1485_vm14, %v1551_v44  ;;  %v2441_v46 = vld.sshfl [vmem:[#allocation4] sm:$0x33 pattern:$0x76325410] }
 0x55f   :  { %1490 = vst.msk [vmem:[#allocation5] sm:$0x1] %vm1485_vm14, %v1488_v45  ;;  %v1704_v47 = vcombine.high %v2441_v46, %v2441_v46  ;;  %v1707_v52 = vpack.c.bf16 %v2441_v46, %v2441_v46 }
 0x561   :  { %v1675_v48 = vpop.permute.xlu1 %1674  ;;  %v1708_v49 = vpack.c.bf16 %v1704_v47, %v1704_v47 }
 0x562   :  { %v1613_v51 = vpop.permute.xlu0 %1612 }
 0x563   :  { %1876 = vmatprep.mubr.bf16.mxu1 %v1708_v49  ;;  %v2459_v49 = vld [vmem:[%s3671_s12] ss:$0 sm:$0xff] }
 0x564   :  { %1877 = vmatmul.mubr.bf16.vlgmr.msra.gmra.mrb[16].mxu1 %v1707_v52 }
 0x565   :  { %2644 = vmatpush3.bf16.msra.mxu1 %v2915_v50  ;;  %v1568_v54 = vpop.permute.xlu1 %1567 }
 0x566   :  { %v1506_v56 = vpop.permute.xlu0 %1505  ;;  %1570 = vst.msk [vmem:[#allocation5 + $0x2] sm:$0x1] %vm1503_vm15, %v1568_v54  ;;  %2645 = vmatprep.subr.bf16.mxu1 %v2916_v53 }
 0x567   :  { %1508 = vst.msk [vmem:[#allocation5] sm:$0x1] %vm1503_vm15, %v1506_v56 }
 0x569   :  { %2646 = vmatpush3.bf16.msra.mxu1 %v2917_v55  ;;  %v1644_v58 = vpop.permute.xlu1 %1643 }
 0x56a   :  { %1646 = vst.msk [vmem:[#allocation5 + $0x3] sm:$0x1] %vm1444_vm12, %v1644_v58  ;;  %v1582_v60 = vpop.permute.xlu0 %1581  ;;  %2647 = vmatprep.subr.bf16.mxu1 %v2918_v57 }
 0x56b   :  { %1660 = vst.msk [vmem:[#allocation5 + $0x3] sm:$0x1] %vm1470_vm13, %v3477_v14  ;;  %v2930_v14 = vld [vmem:[%s3670_s11] sm:$0xff]  }
 0x56c   :  { %1584 = vst.msk [vmem:[#allocation5 + $0x1] sm:$0x1] %vm1444_vm12, %v1582_v60  ;;  %2769 = vmatpush3.bf16.msra.mxu0 %v2930_v14 }
 0x56d   :  { %1677 = vst.msk [vmem:[#allocation5 + $0x3] sm:$0x1] %vm1485_vm14, %v1675_v48  ;;  %2648 = vmatpush3.bf16.msra.mxu1 %v2919_v59  ;;  %v1692_v62 = vpop.permute.xlu1 %1691  ;;  %2770 = vmatprep.subr.bf16.mxu0 %v3022_v0 }
 0x56e   :  { %1598 = vst.msk [vmem:[#allocation5 + $0x1] sm:$0x1] %vm1470_vm13, %v3450_v2  ;;  %v1630_v1 = vpop.permute.xlu0 %1629  ;;  %2649 = vmatprep.subr.bf16.mxu1 %v2920_v61  ;;  %v2923_v2 = vld [vmem:[%s3672_s13 + $0x20] sm:$0xff]  }
 0x56f   :  { %1615 = vst.msk [vmem:[#allocation5 + $0x1] sm:$0x1] %vm1485_vm14, %v1613_v51 }
 0x570   :  { %1694 = vst.msk [vmem:[#allocation5 + $0x3] sm:$0x1] %vm1503_vm15, %v1692_v62  ;;  %1632 = vst.msk [vmem:[#allocation5 + $0x1] sm:$0x1] %vm1503_vm15, %v1630_v1  ;;  %2771 = vmatpush3.bf16.msra.mxu0 %v2931_v15 }
 0x571   :  { %2650 = vmatpush3.bf16.msra.mxu1 %v2921_v63  ;;  %2776 = vmatprep.subr.bf16.mxu0 %v3022_v0 }
 0x572   :  { %2651 = vmatprep.subr.bf16.mxu1 %v2922_v3 }
 0x575   :  { %2652 = vmatpush3.bf16.msra.mxu1 %v2923_v2 }
 0x576   :  { %2653 = vmatprep.subr.bf16.mxu1 %v2924_v4 }
 0x577   :  { %v2463_v7 = vld.sshfl [vmem:[#allocation5] sm:$0x33 pattern:$0x76325410] }
 0x578   :  { %v1970_v8 = vcombine.high %v2463_v7, %v2463_v7  ;;  %v1973_v13 = vpack.c.bf16 %v2463_v7, %v2463_v7 }
 0x579   :  { %2654 = vmatpush3.bf16.msra.mxu1 %v2925_v5 }
 0x57a   :  { %v1974_v9 = vpack.c.bf16 %v1970_v8, %v1970_v8  ;;  %2655 = vmatprep.subr.bf16.mxu1 %v2926_v6 }
 0x57c   :  { %2142 = vmatprep.mubr.bf16.mxu1 %v1974_v9 }
 0x57d   :  { %2656 = vmatpush3.bf16.msra.mxu1 %v2927_v23 }
 0x57e   :  { %2657 = vmatprep.subr.bf16.mxu1 %v2928_v12 }
 0x581   :  { %2658 = vmatpush3.bf16.msra.mxu1 %v2929_v24 }
 0x584   :  { %2143 = vmatmul.mubr.bf16.vlgmr.msra.gmra.mrb[20].mxu1 %v1973_v13 }
 0x637   :  { %v2634_v16 = vpop.f32.mrb[16].mxu1 }
 0x638   :  { %v2635_v18 = vpop.f32.mrb[17].mxu1 }
 0x639   :  { %v2636_v19 = vadd.f32 %v2635_v18, %v2634_v16  ;;  %v2637_v20 = vpop.f32.mrb[18].mxu1 }
 0x63a   :  { %v2638_v21 = vpop.f32.mrb[19].mxu1 }
 0x63b   :  { %v1879_v22 = vadd.f32 %v2636_v19, %v2442_v17 }
 0x63d   :  { %v1884_v25 = vmin.f32 %v1879_v22, 0.0  ;;  %vm1891_vm1 = vcmp.gt.f32.partialorder %v1879_v22, 0.0 }
 0x63f   :  { %v1887_v26 = vmul.f32 1.442695, %v1884_v25  ;;  %v1885_v27 = vmul.f32 0.5, %v1884_v25 }
 0x641   :  { %2934 = vpow2.f32 %v1887_v26 }
 0x642   :  { %2936 = vtanh.f32 %v1885_v27 }
 0x64b   :  { %v2935_v28 = vpop.eup %2934 }
 0x64c   :  { %v1889_v29 = vadd.f32 1.0, %v2935_v28  ;;  %v2937_v30 = vpop.eup %2936 }
 0x64e   :  { %v1890_v31 = vmul.f32 %v2937_v30, %v1889_v29 }
 0x650   :  { %v1892_v32 = vsel %vm1891_vm1, %v1879_v22, %v1890_v31 }
 0x651   :  { %v1893_v34 = vpack.c.bf16 %v1892_v32, %v1892_v32 }
 0x653   :  { %2773 = vmatmul.mubr.msk.bf16.vlgmr.msra.gmra.mrb[20].mxu0 %vm1917_vm2, %v1893_v34 }
 0x654   :  { %2777 = vmatpush3.bf16.msra.mxu0 %v2932_v33  ;;  %2780 = vmatprep.mubr.msk.bf16.mxu0 %vm3023_vm0, %v3022_v0 }
 0x655   :  { %2778 = vmatprep.subr.bf16.mxu0 %v3022_v0 }
 0x657   :  { %v2659_v36 = vpop.f32.mrb[20].mxu1 }
 0x658   :  { %v2660_v38 = vpop.f32.mrb[21].mxu1  ;;  %2779 = vmatpush3.bf16.msra.mxu0 %v2933_v35 }
 0x659   :  { %v2661_v39 = vadd.f32 %v2660_v38, %v2659_v36  ;;  %v2662_v40 = vpop.f32.mrb[22].mxu1 }
 0x65a   :  { %v2663_v10 = vpop.f32.mrb[23].mxu1 }
 0x65b   :  { %v2145_v11 = vadd.f32 %v2661_v39, %v2464_v37 }
 0x65d   :  { %v2150_v41 = vmin.f32 %v2145_v11, 0.0  ;;  %vm2157_vm0 = vcmp.gt.f32.partialorder %v2145_v11, 0.0 }
 0x65f   :  { %v2153_v42 = vmul.f32 1.442695, %v2150_v41  ;;  %v2151_v43 = vmul.f32 0.5, %v2150_v41 }
 0x661   :  { %2938 = vpow2.f32 %v2153_v42 }
 0x662   :  { %2940 = vtanh.f32 %v2151_v43 }
 0x66b   :  { %v2939_v44 = vpop.eup %2938 }
 0x66c   :  { %v2155_v45 = vadd.f32 1.0, %v2939_v44  ;;  %v2941_v46 = vpop.eup %2940 }
 0x66e   :  { %v2156_v0 = vmul.f32 %v2941_v46, %v2155_v45 }
 0x670   :  { %v2158_v47 = vsel %vm2157_vm0, %v2145_v11, %v2156_v0 }
 0x671   :  { %v2159_v48 = vpack.c.bf16 %v2158_v47, %v2158_v47 }
 0x673   :  { %2781 = vmatmul.mubr.msk.bf16.vlgmr.msra.gmra.mrb[24].mxu0 %vm1917_vm2, %v2159_v48 }
 0x726   :  { %v1955_v50 = vpop.f32.mrb[20].mxu0 }
 0x727   :  { %v1956_v51 = vadd.f32 %v2459_v49, %v1955_v50  ;;  %v2774_v52 = vpop.f32.mrb[21].mxu0 }
 0x728   :  { %v1958_v53 = vpop.f32.mrb[22].mxu0 }
 0x729   :  { %v2775_v54 = vpop.f32.mrb[23].mxu0  ;;  %2229 = vst.msk [vmem:[#allocation10] sm:$0x3] %vm2228_vm3, %v1956_v51 }
 0x72a   :  { %2980 = shalt.err (!%p2977_p12)
}
 0x72b   :  { %s2981_s12 = scalar_lea.hbm %s3677_s18, 32 }
 0x72c   :  { %p2982_p13 = scmp.ne.s32.totalorder %s3677_s18, %s2981_s12  ;;  %p2985_p0 = scmp.lt.u32.totalorder %s2981_s12, %s3677_s18 }
 0x72e   :  { %p2987_p1 = pnand %p2985_p0, %p2982_p13 }
 0x730   :  { %2990 = shalt.err (!%p2987_p1)
}
 0x731   :  { %2249 = dma.vmem_to_hbm [thread:$0]  %s2247_s30, 32, %s3677_s18, [#allocation11]   ;;  %v2481_v55 = vld [vmem:[%s3675_s16] ss:$0 sm:$0xff]  ;;  %vm2226_vm4 = vcmask 41984  }
 0x732   :  { %s3028_s20 = smov [#allocation9]  }
 0x733   :  { %s2236_s21 = sshll.u32 %s3028_s20, 4  ;;  %s2237_s21 = int_to_ptr.vmem [resolvable:$true] %s2236_s21 }
 0x734   :  { %s2991_s22 = scalar_lea.vmem %s2237_s21, 32  ;;  %p2996_p3 = scmp.lt.s32.totalorder %s2237_s21, %s2237_s21 }
 0x735   :  { %p2992_p2 = scmp.ne.s32.totalorder %s2237_s21, %s2991_s22  ;;  %p2997_p4 = scmp.lt.s32.totalorder %s2991_s22, %s2991_s22 }
 0x737   :  { %p2998_p5 = por %p2997_p4, %p2996_p3 }
 0x739   :  { %p2999_p6 = pnand %p2998_p5, %p2992_p2 }
 0x746   :  { %v2220_v56 = vpop.f32.mrb[24].mxu0 }
 0x747   :  { %v2221_v57 = vadd.f32 %v2481_v55, %v2220_v56  ;;  %v2782_v58 = vpop.f32.mrb[25].mxu0 }
 0x748   :  { %v2223_v59 = vpop.f32.mrb[26].mxu0 }
 0x749   :  { %v2783_v60 = vpop.f32.mrb[27].mxu0  ;;  %2227 = vst.msk [vmem:[#allocation9] sm:$0x3] %vm2226_vm4, %v2221_v57 }
 0x74a   :  { %3002 = shalt.err (!%p2999_p6)
}
 0x74b   :  { %s3003_s16 = scalar_lea.hbm %s3676_s17, 32 }
 0x74c   :  { %p3004_p7 = scmp.ne.s32.totalorder %s3676_s17, %s3003_s16  ;;  %p3007_p8 = scmp.lt.u32.totalorder %s3003_s16, %s3676_s17 }
 0x74e   :  { %p3009_p9 = pnand %p3007_p8, %p3004_p7 }
 0x750   :  { %3012 = shalt.err (!%p3009_p9)
}
 0x751   :  { %2239 = dma.vmem_to_hbm [thread:$0]  %s2237_s21, 32, %s3676_s17, [#allocation8]  }
 0x752   :  { %3015 = dma.done.wait [#allocation8], 32  }
 0x753   :  { %3016 = vsyncadd [#allocation8], 4294967264 }
 0x754   :  { %3017 = dma.done.wait [#allocation11], 32  }
 0x755   :  { %3018 = vsyncadd [#allocation11], 4294967264 }
 0x756   :  { %2256 = vsyncpa [#allocation7], 1 }
 0x757   :  { %2257 = vsyncpa [#allocation8], 1 }
 0x758   :  { %2258 = vsyncpa [#allocation11], 1 }

</bundles_post_ra>
